<compile_context>
chip_gen: v7x
topology: tpu7x:2x2x1
jax: 0.10.0
libtpu: 0.0.40
codegen_flags: <defaults>
</compile_context>

<pallas_src>
import functools

import jax
import jax.numpy as jnp
from jax import lax
from jax.experimental import pallas as pl
from jax.experimental.pallas import tpu as pltpu


def _round_up(x, m):
    return (x + m - 1) // m * m


# ----------------------------------------------------------------------------
# Fused residual-block kernel (one grid step = one batch element)
# ----------------------------------------------------------------------------
def _resblock_kernel(x_ref, w1_ref, w2_ref, ws_ref, b1_ref, b2_ref, bs_ref,
                     o_ref, out1p_ref, *, stride, A, Ho, Wo):
    Cin = x_ref.shape[-1]
    Cp = o_ref.shape[-1]
    M = Ho * Wo

    # ---- conv1 (3x3, stride) ; BN1 scale folded into w1 ; + bias ; ReLU ----
    acc1 = jnp.zeros((M, Cp), jnp.float32)
    for kh in range(3):
        for kw in range(3):
            phase = (kh % stride) * stride + (kw % stride)
            row0 = phase * A + kh // stride
            col0 = kw // stride
            win = x_ref[0, pl.ds(row0, Ho), pl.ds(col0, Wo), :]     # (Ho, Wo, Cin)
            acc1 = acc1 + jnp.dot(win.reshape(M, Cin), w1_ref[kh * 3 + kw],
                                  preferred_element_type=jnp.float32)
    out1 = jnp.maximum(acc1 + b1_ref[...], 0.0)

    # Stage conv1 output in VMEM with a 1-pixel zero halo (conv2 has pad=1);
    # it never round-trips to HBM.
    out1p_ref[...] = jnp.zeros_like(out1p_ref)
    out1p_ref[pl.ds(1, Ho), pl.ds(1, Wo), :] = (
        out1.reshape(Ho, Wo, Cp).astype(out1p_ref.dtype))

    # ---- conv2 (3x3, stride 1) ; BN2 scale folded into w2 ----
    acc2 = jnp.zeros((M, Cp), jnp.float32)
    for kh in range(3):
        for kw in range(3):
            win = out1p_ref[pl.ds(kh, Ho), pl.ds(kw, Wo), :]        # (Ho, Wo, Cp)
            acc2 = acc2 + jnp.dot(win.reshape(M, Cp), w2_ref[kh * 3 + kw],
                                  preferred_element_type=jnp.float32)

    # ---- shortcut: 1x1 conv (+BN, folded) or identity (ws = padded eye) ----
    c_phase = (1 % stride) * stride + (1 % stride)
    c_row0 = c_phase * A + 1 // stride
    c_col0 = 1 // stride
    xs = x_ref[0, pl.ds(c_row0, Ho), pl.ds(c_col0, Wo), :]          # (Ho, Wo, Cin)
    sc = jnp.dot(xs.reshape(M, Cin), ws_ref[...],
                 preferred_element_type=jnp.float32) + bs_ref[...]

    out = jnp.maximum(acc2 + b2_ref[...] + sc, 0.0)
    o_ref[0] = out.reshape(Ho, Wo, Cp).astype(o_ref.dtype)


# ----------------------------------------------------------------------------
# Wrapper-side layout / parameter preparation
# ----------------------------------------------------------------------------
def _phase_layout(x_nhwc, stride, Ho, Wo):
    """(N,H,W,C) -> (N, s*s*A, B, C): conv-padded, phase-decomposed input.

    Row block [phase*A : phase*A+A] holds x_pad[p::s, q::s] with phase = p*s+q,
    where x_pad is x zero-padded by 1 pixel.  Same total size as x (no im2col
    expansion); all per-tap windows inside the kernel become contiguous slices.
    """
    N, H, W, C = x_nhwc.shape
    E = 2 // stride + 1                       # 3x3 tap extent in phase space
    A, B = Ho + E - 1, Wo + E - 1
    pad_h = max(0, stride * A - (H + 1))
    pad_w = max(0, stride * B - (W + 1))
    xp = jnp.pad(x_nhwc, ((0, 0), (1, pad_h), (1, pad_w), (0, 0)))
    xp = xp[:, :stride * A, :stride * B, :]
    xp = xp.reshape(N, A, stride, B, stride, C)
    xp = jnp.transpose(xp, (0, 2, 4, 1, 3, 5))            # (N, s, s, A, B, C)
    return xp.reshape(N, stride * stride * A, B, C), A, B


def fold_bn(gamma, beta, running_mean, running_var, eps=1e-5):
    scale = gamma / jnp.sqrt(running_var + eps)
    bias = beta - running_mean * scale
    return scale, bias


def _prep_weight(w_oihw, scale, cin_p, cout_p):
    """(Cout,Cin,kh,kw) with BN scale folded -> (kh*kw, cin_p, cout_p) bf16."""
    Cout, Cin, KH, KW = w_oihw.shape
    wf = w_oihw * scale[:, None, None, None]
    wf = jnp.transpose(wf, (2, 3, 1, 0)).reshape(KH * KW, Cin, Cout)
    wf = jnp.pad(wf, ((0, 0), (0, cin_p - Cin), (0, cout_p - Cout)))
    return wf.astype(jnp.bfloat16)


def _prep_bias(bias, cout_p):
    return jnp.pad(bias, (0, cout_p - bias.shape[0])).reshape(1, cout_p).astype(jnp.float32)


def init_params(key, in_channels, out_channels):
    kc1, kb1, kc2, kb2, kcs, kbs = jax.random.split(key, 6)

    def conv_w(k, cout, cin, kh, kw):
        fan_in = cin * kh * kw
        return jax.random.normal(k, (cout, cin, kh, kw), jnp.float32) / jnp.sqrt(fan_in)

    def bn(k, c):
        k0, k1, k2, k3 = jax.random.split(k, 4)
        gamma = 1.0 + 0.1 * jax.random.normal(k0, (c,), jnp.float32)
        beta = 0.1 * jax.random.normal(k1, (c,), jnp.float32)
        rm = 0.1 * jax.random.normal(k2, (c,), jnp.float32)
        rv = 1.0 + 0.1 * jnp.abs(jax.random.normal(k3, (c,), jnp.float32))
        return gamma, beta, rm, rv

    return {
        "conv1_w": conv_w(kc1, out_channels, in_channels, 3, 3),
        "bn1": bn(kb1, out_channels),
        "conv2_w": conv_w(kc2, out_channels, out_channels, 3, 3),
        "bn2": bn(kb2, out_channels),
        "sc_w": conv_w(kcs, out_channels, in_channels, 1, 1),
        "bn_sc": bn(kbs, out_channels),
    }


# ----------------------------------------------------------------------------
# ResidualBlock forward (single fused Pallas call)
# ----------------------------------------------------------------------------
def residual_block_forward(x_nchw, params, in_channels, out_channels, stride=1):
    x = jnp.transpose(x_nchw, (0, 2, 3, 1)).astype(jnp.float32)     # NCHW -> NHWC
    N, H, W, _ = x.shape
    Ho = (H + 2 - 3) // stride + 1
    Wo = (W + 2 - 3) // stride + 1
    Cp = _round_up(out_channels, 128)          # lane-dense output channels

    xph, A, B = _phase_layout(x.astype(jnp.bfloat16), stride, Ho, Wo)

    s1, b1 = fold_bn(*params["bn1"])
    s2, b2 = fold_bn(*params["bn2"])
    w1 = _prep_weight(params["conv1_w"], s1, in_channels, Cp)        # (9, Cin, Cp)
    w2 = _prep_weight(params["conv2_w"], s2, Cp, Cp)                 # (9, Cp, Cp)
    b1p = _prep_bias(b1, Cp)
    b2p = _prep_bias(b2, Cp)

    if stride != 1 or in_channels != out_channels:
        ss, bs = fold_bn(*params["bn_sc"])
        ws = _prep_weight(params["sc_w"], ss, in_channels, Cp)[0]    # (Cin, Cp)
        bsp = _prep_bias(bs, Cp)
    else:
        ws = jnp.pad(jnp.eye(in_channels, dtype=jnp.float32),
                     ((0, 0), (0, Cp - out_channels))).astype(jnp.bfloat16)
        bsp = jnp.zeros((1, Cp), jnp.float32)

    kernel = functools.partial(_resblock_kernel, stride=stride, A=A, Ho=Ho, Wo=Wo)
    out = pl.pallas_call(
        kernel,
        out_shape=jax.ShapeDtypeStruct((N, Ho, Wo, Cp), jnp.float32),
        grid=(N,),
        in_specs=[
            pl.BlockSpec((1, stride * stride * A, B, in_channels),
                         lambda n: (n, 0, 0, 0)),                    # phased input
            pl.BlockSpec((9, in_channels, Cp), lambda n: (0, 0, 0)), # w1 (folded)
            pl.BlockSpec((9, Cp, Cp), lambda n: (0, 0, 0)),          # w2 (folded)
            pl.BlockSpec((in_channels, Cp), lambda n: (0, 0)),       # shortcut w
            pl.BlockSpec((1, Cp), lambda n: (0, 0)),                 # bias1
            pl.BlockSpec((1, Cp), lambda n: (0, 0)),                 # bias2
            pl.BlockSpec((1, Cp), lambda n: (0, 0)),                 # shortcut bias
        ],
        out_specs=pl.BlockSpec((1, Ho, Wo, Cp), lambda n: (n, 0, 0, 0)),
        scratch_shapes=[pltpu.VMEM((Ho + 2, Wo + 2, Cp), jnp.bfloat16)],
        compiler_params=pltpu.CompilerParams(
            dimension_semantics=("parallel",)),   # batch sharded across TCs on v7x
    )(xph, w1, w2, ws, b1p, b2p, bsp)

    out = out[..., :out_channels]
    return jnp.transpose(out, (0, 3, 1, 2))       # NHWC -> NCHW


# ----------------------------------------------------------------------------
# Pure-JAX reference (lax.conv based, mirrors the kernel's bf16 quantization)
# ----------------------------------------------------------------------------
def _ref_conv(x_nhwc, w_oihw, scale, stride, pad):
    w = w_oihw * scale[:, None, None, None]
    w = jnp.transpose(w, (2, 3, 1, 0)).astype(jnp.bfloat16)          # HWIO
    return lax.conv_general_dilated(
        x_nhwc.astype(jnp.bfloat16), w, window_strides=(stride, stride),
        padding=[(pad, pad), (pad, pad)],
        dimension_numbers=("NHWC", "HWIO", "NHWC"),
        preferred_element_type=jnp.float32)


def reference_forward(x_nchw, params, in_channels, out_channels, stride=1):
    x = jnp.transpose(x_nchw, (0, 2, 3, 1)).astype(jnp.float32)
    s1, b1 = fold_bn(*params["bn1"])
    s2, b2 = fold_bn(*params["bn2"])
    out1 = jnp.maximum(_ref_conv(x, params["conv1_w"], s1, stride, 1) + b1, 0.0)
    out1 = out1.astype(jnp.bfloat16).astype(jnp.float32)   # mirror VMEM staging dtype
    out = _ref_conv(out1, params["conv2_w"], s2, 1, 1) + b2
    if stride != 1 or in_channels != out_channels:
        ss, bs = fold_bn(*params["bn_sc"])
        sc = _ref_conv(x, params["sc_w"], ss, stride, 0) + bs
    else:
        sc = x.astype(jnp.bfloat16).astype(jnp.float32)
    out = jnp.maximum(out + sc, 0.0)
    return jnp.transpose(out, (0, 3, 1, 2))


if __name__ == "__main__":
    key = jax.random.PRNGKey(0)
    k_x, k_p = jax.random.split(key)

    # Main test: projection shortcut (stride=2, Cin != Cout)
    N, Cin, Cout, H, W, stride = 2, 4, 8, 16, 16, 2
    x = jax.random.normal(k_x, (N, Cin, H, W), jnp.float32)
    params = init_params(k_p, Cin, Cout)

    out = jax.block_until_ready(
        residual_block_forward(x, params, Cin, Cout, stride=stride))
    ref = jax.block_until_ready(
        reference_forward(x, params, Cin, Cout, stride=stride))
    assert out.shape == (N, Cout, H // stride, W // stride), out.shape
    assert jnp.allclose(out, ref, atol=2e-2, rtol=2e-2), \
        float(jnp.max(jnp.abs(out - ref)))

    # Secondary test: identity shortcut (stride=1, Cin == Cout)
    k_x2, k_p2 = jax.random.split(jax.random.PRNGKey(1))
    x2 = jax.random.normal(k_x2, (2, 8, 16, 16), jnp.float32)
    params2 = init_params(k_p2, 8, 8)
    out2 = jax.block_until_ready(
        residual_block_forward(x2, params2, 8, 8, stride=1))
    ref2 = reference_forward(x2, params2, 8, 8, stride=1)
    assert out2.shape == (2, 8, 16, 16), out2.shape
    assert jnp.allclose(out2, ref2, atol=2e-2, rtol=2e-2), \
        float(jnp.max(jnp.abs(out2 - ref2)))

    print("KERNEL_OK")
</pallas_src>

<mosaic_0001>
module attributes {stable_mosaic.version = 11 : i64} {
  func.func @_resblock_kernel(%arg0: i32, %arg1: memref<1x36x9x4xbf16, #tpu.memory_space<vmem>>, %arg2: memref<9x4x128xbf16, #tpu.memory_space<vmem>>, %arg3: memref<9x128x128xbf16, #tpu.memory_space<vmem>>, %arg4: memref<4x128xbf16, #tpu.memory_space<vmem>>, %arg5: memref<1x128xf32, #tpu.memory_space<vmem>>, %arg6: memref<1x128xf32, #tpu.memory_space<vmem>>, %arg7: memref<1x128xf32, #tpu.memory_space<vmem>>, %arg8: memref<1x8x8x128xf32, #tpu.memory_space<vmem>>, %arg9: memref<10x10x128xbf16, #tpu.memory_space<vmem>>) attributes {dimension_semantics = [#tpu.dimension_semantics<parallel>], iteration_bounds = array<i64: 2>, scalar_prefetch = 0 : i64, scratch_operands = 1 : i64, tpu.core_type = #tpu.core_type<tc>, window_params = [{transform_indices = @transform_0, window_bounds = array<i64: 1, 36, 9, 4>}, {pipeline_mode = #tpu.pipeline_mode<synchronous>, transform_indices = @transform_1, window_bounds = array<i64: 9, 4, 128>}, {pipeline_mode = #tpu.pipeline_mode<synchronous>, transform_indices = @transform_2, window_bounds = array<i64: 9, 128, 128>}, {pipeline_mode = #tpu.pipeline_mode<synchronous>, transform_indices = @transform_3, window_bounds = array<i64: 4, 128>}, {pipeline_mode = #tpu.pipeline_mode<synchronous>, transform_indices = @transform_4, window_bounds = array<i64: 1, 128>}, {pipeline_mode = #tpu.pipeline_mode<synchronous>, transform_indices = @transform_5, window_bounds = array<i64: 1, 128>}, {pipeline_mode = #tpu.pipeline_mode<synchronous>, transform_indices = @transform_6, window_bounds = array<i64: 1, 128>}, {transform_indices = @transform_7, window_bounds = array<i64: 1, 8, 8, 128>}]} {
    %cst = arith.constant 0.000000e+00 : f32
    %0 = vector.broadcast %cst : f32 to vector<64x128xf32>
    %c0 = arith.constant 0 : index
    %c0_0 = arith.constant 0 : index
    %c0_1 = arith.constant 0 : index
    %c0_2 = arith.constant 0 : index
    %1 = vector.load %arg1[%c0, %c0_0, %c0_1, %c0_2] : memref<1x36x9x4xbf16, #tpu.memory_space<vmem>>, vector<1x8x8x4xbf16>
    %2 = vector.shape_cast %1 : vector<1x8x8x4xbf16> to vector<8x8x4xbf16>
    %3 = vector.shape_cast %2 : vector<8x8x4xbf16> to vector<64x4xbf16>
    %c0_3 = arith.constant 0 : index
    %c0_4 = arith.constant 0 : index
    %c0_5 = arith.constant 0 : index
    %4 = vector.load %arg2[%c0_3, %c0_4, %c0_5] : memref<9x4x128xbf16, #tpu.memory_space<vmem>>, vector<1x4x128xbf16>
    %5 = vector.shape_cast %4 : vector<1x4x128xbf16> to vector<4x128xbf16>
    %cst_6 = arith.constant dense<0.000000e+00> : vector<64x128xf32>
    %6 = tpu.matmul %3, %5, %cst_6 {dimension_numbers = #tpu.dot_dimension_numbers<[1], [0], [0], [1], [0, 0, 1, 1], [], []>} : vector<64x4xbf16>, vector<4x128xbf16>, vector<64x128xf32> -> vector<64x128xf32>
    %7 = arith.addf %0, %6 : vector<64x128xf32>
    %c0_7 = arith.constant 0 : index
    %c9 = arith.constant 9 : index
    %c0_8 = arith.constant 0 : index
    %c0_9 = arith.constant 0 : index
    %8 = vector.load %arg1[%c0_7, %c9, %c0_8, %c0_9] : memref<1x36x9x4xbf16, #tpu.memory_space<vmem>>, vector<1x8x8x4xbf16>
    %9 = vector.shape_cast %8 : vector<1x8x8x4xbf16> to vector<8x8x4xbf16>
    %10 = vector.shape_cast %9 : vector<8x8x4xbf16> to vector<64x4xbf16>
    %c1 = arith.constant 1 : index
    %c0_10 = arith.constant 0 : index
    %c0_11 = arith.constant 0 : index
    %11 = vector.load %arg2[%c1, %c0_10, %c0_11] : memref<9x4x128xbf16, #tpu.memory_space<vmem>>, vector<1x4x128xbf16>
    %12 = vector.shape_cast %11 : vector<1x4x128xbf16> to vector<4x128xbf16>
    %cst_12 = arith.constant dense<0.000000e+00> : vector<64x128xf32>
    %13 = tpu.matmul %10, %12, %cst_12 {dimension_numbers = #tpu.dot_dimension_numbers<[1], [0], [0], [1], [0, 0, 1, 1], [], []>} : vector<64x4xbf16>, vector<4x128xbf16>, vector<64x128xf32> -> vector<64x128xf32>
    %14 = arith.addf %7, %13 : vector<64x128xf32>
    %c0_13 = arith.constant 0 : index
    %c0_14 = arith.constant 0 : index
    %c1_15 = arith.constant 1 : index
    %c0_16 = arith.constant 0 : index
    %15 = vector.load %arg1[%c0_13, %c0_14, %c1_15, %c0_16] : memref<1x36x9x4xbf16, #tpu.memory_space<vmem>>, vector<1x8x8x4xbf16>
    %16 = vector.shape_cast %15 : vector<1x8x8x4xbf16> to vector<8x8x4xbf16>
    %17 = vector.shape_cast %16 : vector<8x8x4xbf16> to vector<64x4xbf16>
    %c2 = arith.constant 2 : index
    %c0_17 = arith.constant 0 : index
    %c0_18 = arith.constant 0 : index
    %18 = vector.load %arg2[%c2, %c0_17, %c0_18] : memref<9x4x128xbf16, #tpu.memory_space<vmem>>, vector<1x4x128xbf16>
    %19 = vector.shape_cast %18 : vector<1x4x128xbf16> to vector<4x128xbf16>
    %cst_19 = arith.constant dense<0.000000e+00> : vector<64x128xf32>
    %20 = tpu.matmul %17, %19, %cst_19 {dimension_numbers = #tpu.dot_dimension_numbers<[1], [0], [0], [1], [0, 0, 1, 1], [], []>} : vector<64x4xbf16>, vector<4x128xbf16>, vector<64x128xf32> -> vector<64x128xf32>
    %21 = arith.addf %14, %20 : vector<64x128xf32>
    %c0_20 = arith.constant 0 : index
    %c18 = arith.constant 18 : index
    %c0_21 = arith.constant 0 : index
    %c0_22 = arith.constant 0 : index
    %22 = vector.load %arg1[%c0_20, %c18, %c0_21, %c0_22] : memref<1x36x9x4xbf16, #tpu.memory_space<vmem>>, vector<1x8x8x4xbf16>
    %23 = vector.shape_cast %22 : vector<1x8x8x4xbf16> to vector<8x8x4xbf16>
    %24 = vector.shape_cast %23 : vector<8x8x4xbf16> to vector<64x4xbf16>
    %c3 = arith.constant 3 : index
    %c0_23 = arith.constant 0 : index
    %c0_24 = arith.constant 0 : index
    %25 = vector.load %arg2[%c3, %c0_23, %c0_24] : memref<9x4x128xbf16, #tpu.memory_space<vmem>>, vector<1x4x128xbf16>
    %26 = vector.shape_cast %25 : vector<1x4x128xbf16> to vector<4x128xbf16>
    %cst_25 = arith.constant dense<0.000000e+00> : vector<64x128xf32>
    %27 = tpu.matmul %24, %26, %cst_25 {dimension_numbers = #tpu.dot_dimension_numbers<[1], [0], [0], [1], [0, 0, 1, 1], [], []>} : vector<64x4xbf16>, vector<4x128xbf16>, vector<64x128xf32> -> vector<64x128xf32>
    %28 = arith.addf %21, %27 : vector<64x128xf32>
    %c0_26 = arith.constant 0 : index
    %c27 = arith.constant 27 : index
    %c0_27 = arith.constant 0 : index
    %c0_28 = arith.constant 0 : index
    %29 = vector.load %arg1[%c0_26, %c27, %c0_27, %c0_28] : memref<1x36x9x4xbf16, #tpu.memory_space<vmem>>, vector<1x8x8x4xbf16>
    %30 = vector.shape_cast %29 : vector<1x8x8x4xbf16> to vector<8x8x4xbf16>
    %31 = vector.shape_cast %30 : vector<8x8x4xbf16> to vector<64x4xbf16>
    %c4 = arith.constant 4 : index
    %c0_29 = arith.constant 0 : index
    %c0_30 = arith.constant 0 : index
    %32 = vector.load %arg2[%c4, %c0_29, %c0_30] : memref<9x4x128xbf16, #tpu.memory_space<vmem>>, vector<1x4x128xbf16>
    %33 = vector.shape_cast %32 : vector<1x4x128xbf16> to vector<4x128xbf16>
    %cst_31 = arith.constant dense<0.000000e+00> : vector<64x128xf32>
    %34 = tpu.matmul %31, %33, %cst_31 {dimension_numbers = #tpu.dot_dimension_numbers<[1], [0], [0], [1], [0, 0, 1, 1], [], []>} : vector<64x4xbf16>, vector<4x128xbf16>, vector<64x128xf32> -> vector<64x128xf32>
    %35 = arith.addf %28, %34 : vector<64x128xf32>
    %c0_32 = arith.constant 0 : index
    %c18_33 = arith.constant 18 : index
    %c1_34 = arith.constant 1 : index
    %c0_35 = arith.constant 0 : index
    %36 = vector.load %arg1[%c0_32, %c18_33, %c1_34, %c0_35] : memref<1x36x9x4xbf16, #tpu.memory_space<vmem>>, vector<1x8x8x4xbf16>
    %37 = vector.shape_cast %36 : vector<1x8x8x4xbf16> to vector<8x8x4xbf16>
    %38 = vector.shape_cast %37 : vector<8x8x4xbf16> to vector<64x4xbf16>
    %c5 = arith.constant 5 : index
    %c0_36 = arith.constant 0 : index
    %c0_37 = arith.constant 0 : index
    %39 = vector.load %arg2[%c5, %c0_36, %c0_37] : memref<9x4x128xbf16, #tpu.memory_space<vmem>>, vector<1x4x128xbf16>
    %40 = vector.shape_cast %39 : vector<1x4x128xbf16> to vector<4x128xbf16>
    %cst_38 = arith.constant dense<0.000000e+00> : vector<64x128xf32>
    %41 = tpu.matmul %38, %40, %cst_38 {dimension_numbers = #tpu.dot_dimension_numbers<[1], [0], [0], [1], [0, 0, 1, 1], [], []>} : vector<64x4xbf16>, vector<4x128xbf16>, vector<64x128xf32> -> vector<64x128xf32>
    %42 = arith.addf %35, %41 : vector<64x128xf32>
    %c0_39 = arith.constant 0 : index
    %c1_40 = arith.constant 1 : index
    %c0_41 = arith.constant 0 : index
    %c0_42 = arith.constant 0 : index
    %43 = vector.load %arg1[%c0_39, %c1_40, %c0_41, %c0_42] : memref<1x36x9x4xbf16, #tpu.memory_space<vmem>>, vector<1x8x8x4xbf16>
    %44 = vector.shape_cast %43 : vector<1x8x8x4xbf16> to vector<8x8x4xbf16>
    %45 = vector.shape_cast %44 : vector<8x8x4xbf16> to vector<64x4xbf16>
    %c6 = arith.constant 6 : index
    %c0_43 = arith.constant 0 : index
    %c0_44 = arith.constant 0 : index
    %46 = vector.load %arg2[%c6, %c0_43, %c0_44] : memref<9x4x128xbf16, #tpu.memory_space<vmem>>, vector<1x4x128xbf16>
    %47 = vector.shape_cast %46 : vector<1x4x128xbf16> to vector<4x128xbf16>
    %cst_45 = arith.constant dense<0.000000e+00> : vector<64x128xf32>
    %48 = tpu.matmul %45, %47, %cst_45 {dimension_numbers = #tpu.dot_dimension_numbers<[1], [0], [0], [1], [0, 0, 1, 1], [], []>} : vector<64x4xbf16>, vector<4x128xbf16>, vector<64x128xf32> -> vector<64x128xf32>
    %49 = arith.addf %42, %48 : vector<64x128xf32>
    %c0_46 = arith.constant 0 : index
    %c10 = arith.constant 10 : index
    %c0_47 = arith.constant 0 : index
    %c0_48 = arith.constant 0 : index
    %50 = vector.load %arg1[%c0_46, %c10, %c0_47, %c0_48] : memref<1x36x9x4xbf16, #tpu.memory_space<vmem>>, vector<1x8x8x4xbf16>
    %51 = vector.shape_cast %50 : vector<1x8x8x4xbf16> to vector<8x8x4xbf16>
    %52 = vector.shape_cast %51 : vector<8x8x4xbf16> to vector<64x4xbf16>
    %c7 = arith.constant 7 : index
    %c0_49 = arith.constant 0 : index
    %c0_50 = arith.constant 0 : index
    %53 = vector.load %arg2[%c7, %c0_49, %c0_50] : memref<9x4x128xbf16, #tpu.memory_space<vmem>>, vector<1x4x128xbf16>
    %54 = vector.shape_cast %53 : vector<1x4x128xbf16> to vector<4x128xbf16>
    %cst_51 = arith.constant dense<0.000000e+00> : vector<64x128xf32>
    %55 = tpu.matmul %52, %54, %cst_51 {dimension_numbers = #tpu.dot_dimension_numbers<[1], [0], [0], [1], [0, 0, 1, 1], [], []>} : vector<64x4xbf16>, vector<4x128xbf16>, vector<64x128xf32> -> vector<64x128xf32>
    %56 = arith.addf %49, %55 : vector<64x128xf32>
    %c0_52 = arith.constant 0 : index
    %c1_53 = arith.constant 1 : index
    %c1_54 = arith.constant 1 : index
    %c0_55 = arith.constant 0 : index
    %57 = vector.load %arg1[%c0_52, %c1_53, %c1_54, %c0_55] : memref<1x36x9x4xbf16, #tpu.memory_space<vmem>>, vector<1x8x8x4xbf16>
    %58 = vector.shape_cast %57 : vector<1x8x8x4xbf16> to vector<8x8x4xbf16>
    %59 = vector.shape_cast %58 : vector<8x8x4xbf16> to vector<64x4xbf16>
    %c8 = arith.constant 8 : index
    %c0_56 = arith.constant 0 : index
    %c0_57 = arith.constant 0 : index
    %60 = vector.load %arg2[%c8, %c0_56, %c0_57] : memref<9x4x128xbf16, #tpu.memory_space<vmem>>, vector<1x4x128xbf16>
    %61 = vector.shape_cast %60 : vector<1x4x128xbf16> to vector<4x128xbf16>
    %cst_58 = arith.constant dense<0.000000e+00> : vector<64x128xf32>
    %62 = tpu.matmul %59, %61, %cst_58 {dimension_numbers = #tpu.dot_dimension_numbers<[1], [0], [0], [1], [0, 0, 1, 1], [], []>} : vector<64x4xbf16>, vector<4x128xbf16>, vector<64x128xf32> -> vector<64x128xf32>
    %63 = arith.addf %56, %62 : vector<64x128xf32>
    %c0_59 = arith.constant 0 : index
    %c0_60 = arith.constant 0 : index
    %64 = vector.load %arg5[%c0_59, %c0_60] : memref<1x128xf32, #tpu.memory_space<vmem>>, vector<1x128xf32>
    %65 = vector.broadcast %64 : vector<1x128xf32> to vector<64x128xf32>
    %66 = arith.addf %63, %65 : vector<64x128xf32>
    %cst_61 = arith.constant 0.000000e+00 : f32
    %67 = vector.broadcast %cst_61 : f32 to vector<64x128xf32>
    %68 = arith.maximumf %66, %67 : vector<64x128xf32>
    %cst_62 = arith.constant 0.000000e+00 : bf16
    %69 = vector.broadcast %cst_62 : bf16 to vector<10x10x128xbf16>
    %c0_63 = arith.constant 0 : index
    %c0_64 = arith.constant 0 : index
    %c0_65 = arith.constant 0 : index
    %70 = vector.load %arg9[%c0_63, %c0_64, %c0_65] : memref<10x10x128xbf16, #tpu.memory_space<vmem>>, vector<10x10x128xbf16>
    tpu.vector_store %arg9[%c0_63, %c0_64, %c0_65], %69 {strides = array<i32>} : memref<10x10x128xbf16, #tpu.memory_space<vmem>>, vector<10x10x128xbf16>,
    %71 = vector.shape_cast %68 : vector<64x128xf32> to vector<8x8x128xf32>
    %72 = arith.truncf %71 : vector<8x8x128xf32> to vector<8x8x128xbf16>
    %c1_66 = arith.constant 1 : index
    %c1_67 = arith.constant 1 : index
    %c0_68 = arith.constant 0 : index
    %73 = vector.load %arg9[%c1_66, %c1_67, %c0_68] : memref<10x10x128xbf16, #tpu.memory_space<vmem>>, vector<8x8x128xbf16>
    tpu.vector_store %arg9[%c1_66, %c1_67, %c0_68], %72 {strides = array<i32>} : memref<10x10x128xbf16, #tpu.memory_space<vmem>>, vector<8x8x128xbf16>,
    %cst_69 = arith.constant 0.000000e+00 : f32
    %74 = vector.broadcast %cst_69 : f32 to vector<64x128xf32>
    %c0_70 = arith.constant 0 : index
    %c0_71 = arith.constant 0 : index
    %c0_72 = arith.constant 0 : index
    %75 = vector.load %arg9[%c0_70, %c0_71, %c0_72] : memref<10x10x128xbf16, #tpu.memory_space<vmem>>, vector<8x8x128xbf16>
    %76 = vector.shape_cast %75 : vector<8x8x128xbf16> to vector<64x128xbf16>
    %c0_73 = arith.constant 0 : index
    %c0_74 = arith.constant 0 : index
    %c0_75 = arith.constant 0 : index
    %77 = vector.load %arg3[%c0_73, %c0_74, %c0_75] : memref<9x128x128xbf16, #tpu.memory_space<vmem>>, vector<1x128x128xbf16>
    %78 = vector.shape_cast %77 : vector<1x128x128xbf16> to vector<128x128xbf16>
    %cst_76 = arith.constant dense<0.000000e+00> : vector<64x128xf32>
    %79 = tpu.matmul %76, %78, %cst_76 {dimension_numbers = #tpu.dot_dimension_numbers<[1], [0], [0], [1], [0, 0, 1, 1], [], []>} : vector<64x128xbf16>, vector<128x128xbf16>, vector<64x128xf32> -> vector<64x128xf32>
    %80 = arith.addf %74, %79 : vector<64x128xf32>
    %c0_77 = arith.constant 0 : index
    %c1_78 = arith.constant 1 : index
    %c0_79 = arith.constant 0 : index
    %81 = vector.load %arg9[%c0_77, %c1_78, %c0_79] : memref<10x10x128xbf16, #tpu.memory_space<vmem>>, vector<8x8x128xbf16>
    %82 = vector.shape_cast %81 : vector<8x8x128xbf16> to vector<64x128xbf16>
    %c1_80 = arith.constant 1 : index
    %c0_81 = arith.constant 0 : index
    %c0_82 = arith.constant 0 : index
    %83 = vector.load %arg3[%c1_80, %c0_81, %c0_82] : memref<9x128x128xbf16, #tpu.memory_space<vmem>>, vector<1x128x128xbf16>
    %84 = vector.shape_cast %83 : vector<1x128x128xbf16> to vector<128x128xbf16>
    %cst_83 = arith.constant dense<0.000000e+00> : vector<64x128xf32>
    %85 = tpu.matmul %82, %84, %cst_83 {dimension_numbers = #tpu.dot_dimension_numbers<[1], [0], [0], [1], [0, 0, 1, 1], [], []>} : vector<64x128xbf16>, vector<128x128xbf16>, vector<64x128xf32> -> vector<64x128xf32>
    %86 = arith.addf %80, %85 : vector<64x128xf32>
    %c0_84 = arith.constant 0 : index
    %c2_85 = arith.constant 2 : index
    %c0_86 = arith.constant 0 : index
    %87 = vector.load %arg9[%c0_84, %c2_85, %c0_86] : memref<10x10x128xbf16, #tpu.memory_space<vmem>>, vector<8x8x128xbf16>
    %88 = vector.shape_cast %87 : vector<8x8x128xbf16> to vector<64x128xbf16>
    %c2_87 = arith.constant 2 : index
    %c0_88 = arith.constant 0 : index
    %c0_89 = arith.constant 0 : index
    %89 = vector.load %arg3[%c2_87, %c0_88, %c0_89] : memref<9x128x128xbf16, #tpu.memory_space<vmem>>, vector<1x128x128xbf16>
    %90 = vector.shape_cast %89 : vector<1x128x128xbf16> to vector<128x128xbf16>
    %cst_90 = arith.constant dense<0.000000e+00> : vector<64x128xf32>
    %91 = tpu.matmul %88, %90, %cst_90 {dimension_numbers = #tpu.dot_dimension_numbers<[1], [0], [0], [1], [0, 0, 1, 1], [], []>} : vector<64x128xbf16>, vector<128x128xbf16>, vector<64x128xf32> -> vector<64x128xf32>
    %92 = arith.addf %86, %91 : vector<64x128xf32>
    %c1_91 = arith.constant 1 : index
    %c0_92 = arith.constant 0 : index
    %c0_93 = arith.constant 0 : index
    %93 = vector.load %arg9[%c1_91, %c0_92, %c0_93] : memref<10x10x128xbf16, #tpu.memory_space<vmem>>, vector<8x8x128xbf16>
    %94 = vector.shape_cast %93 : vector<8x8x128xbf16> to vector<64x128xbf16>
    %c3_94 = arith.constant 3 : index
    %c0_95 = arith.constant 0 : index
    %c0_96 = arith.constant 0 : index
    %95 = vector.load %arg3[%c3_94, %c0_95, %c0_96] : memref<9x128x128xbf16, #tpu.memory_space<vmem>>, vector<1x128x128xbf16>
    %96 = vector.shape_cast %95 : vector<1x128x128xbf16> to vector<128x128xbf16>
    %cst_97 = arith.constant dense<0.000000e+00> : vector<64x128xf32>
    %97 = tpu.matmul %94, %96, %cst_97 {dimension_numbers = #tpu.dot_dimension_numbers<[1], [0], [0], [1], [0, 0, 1, 1], [], []>} : vector<64x128xbf16>, vector<128x128xbf16>, vector<64x128xf32> -> vector<64x128xf32>
    %98 = arith.addf %92, %97 : vector<64x128xf32>
    %c1_98 = arith.constant 1 : index
    %c1_99 = arith.constant 1 : index
    %c0_100 = arith.constant 0 : index
    %99 = vector.load %arg9[%c1_98, %c1_99, %c0_100] : memref<10x10x128xbf16, #tpu.memory_space<vmem>>, vector<8x8x128xbf16>
    %100 = vector.shape_cast %99 : vector<8x8x128xbf16> to vector<64x128xbf16>
    %c4_101 = arith.constant 4 : index
    %c0_102 = arith.constant 0 : index
    %c0_103 = arith.constant 0 : index
    %101 = vector.load %arg3[%c4_101, %c0_102, %c0_103] : memref<9x128x128xbf16, #tpu.memory_space<vmem>>, vector<1x128x128xbf16>
    %102 = vector.shape_cast %101 : vector<1x128x128xbf16> to vector<128x128xbf16>
    %cst_104 = arith.constant dense<0.000000e+00> : vector<64x128xf32>
    %103 = tpu.matmul %100, %102, %cst_104 {dimension_numbers = #tpu.dot_dimension_numbers<[1], [0], [0], [1], [0, 0, 1, 1], [], []>} : vector<64x128xbf16>, vector<128x128xbf16>, vector<64x128xf32> -> vector<64x128xf32>
    %104 = arith.addf %98, %103 : vector<64x128xf32>
    %c1_105 = arith.constant 1 : index
    %c2_106 = arith.constant 2 : index
    %c0_107 = arith.constant 0 : index
    %105 = vector.load %arg9[%c1_105, %c2_106, %c0_107] : memref<10x10x128xbf16, #tpu.memory_space<vmem>>, vector<8x8x128xbf16>
    %106 = vector.shape_cast %105 : vector<8x8x128xbf16> to vector<64x128xbf16>
    %c5_108 = arith.constant 5 : index
    %c0_109 = arith.constant 0 : index
    %c0_110 = arith.constant 0 : index
    %107 = vector.load %arg3[%c5_108, %c0_109, %c0_110] : memref<9x128x128xbf16, #tpu.memory_space<vmem>>, vector<1x128x128xbf16>
    %108 = vector.shape_cast %107 : vector<1x128x128xbf16> to vector<128x128xbf16>
    %cst_111 = arith.constant dense<0.000000e+00> : vector<64x128xf32>
    %109 = tpu.matmul %106, %108, %cst_111 {dimension_numbers = #tpu.dot_dimension_numbers<[1], [0], [0], [1], [0, 0, 1, 1], [], []>} : vector<64x128xbf16>, vector<128x128xbf16>, vector<64x128xf32> -> vector<64x128xf32>
    %110 = arith.addf %104, %109 : vector<64x128xf32>
    %c2_112 = arith.constant 2 : index
    %c0_113 = arith.constant 0 : index
    %c0_114 = arith.constant 0 : index
    %111 = vector.load %arg9[%c2_112, %c0_113, %c0_114] : memref<10x10x128xbf16, #tpu.memory_space<vmem>>, vector<8x8x128xbf16>
    %112 = vector.shape_cast %111 : vector<8x8x128xbf16> to vector<64x128xbf16>
    %c6_115 = arith.constant 6 : index
    %c0_116 = arith.constant 0 : index
    %c0_117 = arith.constant 0 : index
    %113 = vector.load %arg3[%c6_115, %c0_116, %c0_117] : memref<9x128x128xbf16, #tpu.memory_space<vmem>>, vector<1x128x128xbf16>
    %114 = vector.shape_cast %113 : vector<1x128x128xbf16> to vector<128x128xbf16>
    %cst_118 = arith.constant dense<0.000000e+00> : vector<64x128xf32>
    %115 = tpu.matmul %112, %114, %cst_118 {dimension_numbers = #tpu.dot_dimension_numbers<[1], [0], [0], [1], [0, 0, 1, 1], [], []>} : vector<64x128xbf16>, vector<128x128xbf16>, vector<64x128xf32> -> vector<64x128xf32>
    %116 = arith.addf %110, %115 : vector<64x128xf32>
    %c2_119 = arith.constant 2 : index
    %c1_120 = arith.constant 1 : index
    %c0_121 = arith.constant 0 : index
    %117 = vector.load %arg9[%c2_119, %c1_120, %c0_121] : memref<10x10x128xbf16, #tpu.memory_space<vmem>>, vector<8x8x128xbf16>
    %118 = vector.shape_cast %117 : vector<8x8x128xbf16> to vector<64x128xbf16>
    %c7_122 = arith.constant 7 : index
    %c0_123 = arith.constant 0 : index
    %c0_124 = arith.constant 0 : index
    %119 = vector.load %arg3[%c7_122, %c0_123, %c0_124] : memref<9x128x128xbf16, #tpu.memory_space<vmem>>, vector<1x128x128xbf16>
    %120 = vector.shape_cast %119 : vector<1x128x128xbf16> to vector<128x128xbf16>
    %cst_125 = arith.constant dense<0.000000e+00> : vector<64x128xf32>
    %121 = tpu.matmul %118, %120, %cst_125 {dimension_numbers = #tpu.dot_dimension_numbers<[1], [0], [0], [1], [0, 0, 1, 1], [], []>} : vector<64x128xbf16>, vector<128x128xbf16>, vector<64x128xf32> -> vector<64x128xf32>
    %122 = arith.addf %116, %121 : vector<64x128xf32>
    %c2_126 = arith.constant 2 : index
    %c2_127 = arith.constant 2 : index
    %c0_128 = arith.constant 0 : index
    %123 = vector.load %arg9[%c2_126, %c2_127, %c0_128] : memref<10x10x128xbf16, #tpu.memory_space<vmem>>, vector<8x8x128xbf16>
    %124 = vector.shape_cast %123 : vector<8x8x128xbf16> to vector<64x128xbf16>
    %c8_129 = arith.constant 8 : index
    %c0_130 = arith.constant 0 : index
    %c0_131 = arith.constant 0 : index
    %125 = vector.load %arg3[%c8_129, %c0_130, %c0_131] : memref<9x128x128xbf16, #tpu.memory_space<vmem>>, vector<1x128x128xbf16>
    %126 = vector.shape_cast %125 : vector<1x128x128xbf16> to vector<128x128xbf16>
    %cst_132 = arith.constant dense<0.000000e+00> : vector<64x128xf32>
    %127 = tpu.matmul %124, %126, %cst_132 {dimension_numbers = #tpu.dot_dimension_numbers<[1], [0], [0], [1], [0, 0, 1, 1], [], []>} : vector<64x128xbf16>, vector<128x128xbf16>, vector<64x128xf32> -> vector<64x128xf32>
    %128 = arith.addf %122, %127 : vector<64x128xf32>
    %c0_133 = arith.constant 0 : index
    %c27_134 = arith.constant 27 : index
    %c0_135 = arith.constant 0 : index
    %c0_136 = arith.constant 0 : index
    %129 = vector.load %arg1[%c0_133, %c27_134, %c0_135, %c0_136] : memref<1x36x9x4xbf16, #tpu.memory_space<vmem>>, vector<1x8x8x4xbf16>
    %130 = vector.shape_cast %129 : vector<1x8x8x4xbf16> to vector<8x8x4xbf16>
    %131 = vector.shape_cast %130 : vector<8x8x4xbf16> to vector<64x4xbf16>
    %c0_137 = arith.constant 0 : index
    %c0_138 = arith.constant 0 : index
    %132 = vector.load %arg4[%c0_137, %c0_138] : memref<4x128xbf16, #tpu.memory_space<vmem>>, vector<4x128xbf16>
    %cst_139 = arith.constant dense<0.000000e+00> : vector<64x128xf32>
    %133 = tpu.matmul %131, %132, %cst_139 {dimension_numbers = #tpu.dot_dimension_numbers<[1], [0], [0], [1], [0, 0, 1, 1], [], []>} : vector<64x4xbf16>, vector<4x128xbf16>, vector<64x128xf32> -> vector<64x128xf32>
    %c0_140 = arith.constant 0 : index
    %c0_141 = arith.constant 0 : index
    %134 = vector.load %arg7[%c0_140, %c0_141] : memref<1x128xf32, #tpu.memory_space<vmem>>, vector<1x128xf32>
    %135 = vector.broadcast %134 : vector<1x128xf32> to vector<64x128xf32>
    %136 = arith.addf %133, %135 : vector<64x128xf32>
    %c0_142 = arith.constant 0 : index
    %c0_143 = arith.constant 0 : index
    %137 = vector.load %arg6[%c0_142, %c0_143] : memref<1x128xf32, #tpu.memory_space<vmem>>, vector<1x128xf32>
    %138 = vector.broadcast %137 : vector<1x128xf32> to vector<64x128xf32>
    %139 = arith.addf %128, %138 : vector<64x128xf32>
    %140 = arith.addf %139, %136 : vector<64x128xf32>
    %cst_144 = arith.constant 0.000000e+00 : f32
    %141 = vector.broadcast %cst_144 : f32 to vector<64x128xf32>
    %142 = arith.maximumf %140, %141 : vector<64x128xf32>
    %143 = vector.shape_cast %142 : vector<64x128xf32> to vector<8x8x128xf32>
    %c0_145 = arith.constant 0 : index
    %c0_146 = arith.constant 0 : index
    %c0_147 = arith.constant 0 : index
    %c0_148 = arith.constant 0 : index
    %144 = vector.load %arg8[%c0_145, %c0_146, %c0_147, %c0_148] : memref<1x8x8x128xf32, #tpu.memory_space<vmem>>, vector<1x8x8x128xf32>
    %145 = vector.shape_cast %144 : vector<1x8x8x128xf32> to vector<8x8x128xf32>
    %146 = vector.shape_cast %143 : vector<8x8x128xf32> to vector<1x8x8x128xf32>
    tpu.vector_store %arg8[%c0_145, %c0_146, %c0_147, %c0_148], %146 {strides = array<i32>} : memref<1x8x8x128xf32, #tpu.memory_space<vmem>>, vector<1x8x8x128xf32>,
    return
  }
  func.func @transform_0(%arg0: i32) -> (i32, i32, i32, i32) {
    %c0_i32 = arith.constant 0 : i32
    %c0_i32_0 = arith.constant 0 : i32
    %c0_i32_1 = arith.constant 0 : i32
    %c0_i32_2 = arith.constant 0 : i32
    return %arg0, %c0_i32, %c0_i32_0, %c0_i32_1 : i32, i32, i32, i32
  }
  func.func @transform_1(%arg0: i32) -> (i32, i32, i32) {
    %c0_i32 = arith.constant 0 : i32
    %c0_i32_0 = arith.constant 0 : i32
    %c0_i32_1 = arith.constant 0 : i32
    %c0_i32_2 = arith.constant 0 : i32
    return %c0_i32, %c0_i32_0, %c0_i32_1 : i32, i32, i32
  }
  func.func @transform_2(%arg0: i32) -> (i32, i32, i32) {
    %c0_i32 = arith.constant 0 : i32
    %c0_i32_0 = arith.constant 0 : i32
    %c0_i32_1 = arith.constant 0 : i32
    %c0_i32_2 = arith.constant 0 : i32
    return %c0_i32, %c0_i32_0, %c0_i32_1 : i32, i32, i32
  }
  func.func @transform_3(%arg0: i32) -> (i32, i32) {
    %c0_i32 = arith.constant 0 : i32
    %c0_i32_0 = arith.constant 0 : i32
    %c0_i32_1 = arith.constant 0 : i32
    return %c0_i32, %c0_i32_0 : i32, i32
  }
  func.func @transform_4(%arg0: i32) -> (i32, i32) {
    %c0_i32 = arith.constant 0 : i32
    %c0_i32_0 = arith.constant 0 : i32
    %c0_i32_1 = arith.constant 0 : i32
    return %c0_i32, %c0_i32_0 : i32, i32
  }
  func.func @transform_5(%arg0: i32) -> (i32, i32) {
    %c0_i32 = arith.constant 0 : i32
    %c0_i32_0 = arith.constant 0 : i32
    %c0_i32_1 = arith.constant 0 : i32
    return %c0_i32, %c0_i32_0 : i32, i32
  }
  func.func @transform_6(%arg0: i32) -> (i32, i32) {
    %c0_i32 = arith.constant 0 : i32
    %c0_i32_0 = arith.constant 0 : i32
    %c0_i32_1 = arith.constant 0 : i32
    return %c0_i32, %c0_i32_0 : i32, i32
  }
  func.func @transform_7(%arg0: i32) -> (i32, i32, i32, i32) {
    %c0_i32 = arith.constant 0 : i32
    %c0_i32_0 = arith.constant 0 : i32
    %c0_i32_1 = arith.constant 0 : i32
    %c0_i32_2 = arith.constant 0 : i32
    return %arg0, %c0_i32, %c0_i32_0, %c0_i32_1 : i32, i32, i32, i32
  }
}

</mosaic_0001>

<bundles_post_ra>
// kernel: tpu_custom_call.1
= control target key start
LH: loop header
LB: loop body
LE: loop exit
PB: predicated region body
PF: predicated region fallthrough
CT: control target
= control target key end

     0   :  { %12 = vsyncpa [#allocation4], 0  ;;  %s6417_s0 = inlined_call_operand.vmem [shape: bf16[2,36,9,4], index: 0, kind: input, shape index: {}]   ;;  %s6418_s1 = inlined_call_operand.vmem [shape: bf16[9,4,128], index: 1, kind: input, shape index: {}]   ;;  %s6419_s2 = inlined_call_operand.vmem [shape: bf16[9,128,128], index: 2, kind: input, shape index: {}]   ;;  %s6420_s3 = inlined_call_operand.vmem [shape: bf16[4,128], index: 3, kind: input, shape index: {}]   ;;  %s6421_s4 = inlined_call_operand.vmem [shape: f32[1,128], index: 4, kind: input, shape index: {}]   ;;  %s6422_s5 = inlined_call_operand.vmem [shape: f32[1,128], index: 5, kind: input, shape index: {}]   ;;  %s6423_s6 = inlined_call_operand.vmem [shape: f32[1,128], index: 6, kind: input, shape index: {}]   ;;  %s6424_s7 = inlined_call_operand.hbm [shape: f32[2,8,8,128], index: 7, kind: output, shape index: {}]  }
   0x1   :  { %14 = vsyncpa [#allocation4 + $0x1], 0  ;;  %s5433_s24 = smov 0   ;;  %s5435_s25 = smov 0  }
   0x2   :  { %s5437_s26 = smov 0   ;;  %s5439_s27 = smov 0  }
   0x3 LB: > { %s5454_s28 = sadd.s32 4294967295, %s5387_s27   ;;  %s4075_s29 = sadd.s32 4294967294, %s5387_s27   ;;  %s5387_s27 = sphi %s5439_s27, %s6438_s27   ;;  %s5383_s26 = sphi %s5437_s26, %s6437_s26   ;;  %s5379_s25 = sphi %s5435_s25, %s6436_s25   ;;  %s5375_s24 = sphi %s5433_s24, %s6435_s24  }
   0x4   : > { %s5458_s30 = sadd.s32 1, %s5387_s27   ;;  %s179_s8 = sadd.s32 1, %s5383_s26 }
   0x5   : > { %s176_s9 = ssub.s32 %s5387_s27, %s5458_s30  ;;  %p189_p0 = scmp.ne.s32.totalorder %s5383_s26, %s5379_s25 }
   0x6   : > { %p177_p1 = scmp.eq.s32.totalorder %s176_s9, 0  ;;  %p190_p2 = scmp.eq.s32.totalorder %s5454_s28, 1 }
   0x7   : > { %p195_p3 = scmp.ne.s32.totalorder %s5379_s25, %s5375_s24  ;;  %p196_p4 = scmp.eq.s32.totalorder %s4075_s29, 1 }
   0x8   : > { %s5469_s10 = scalar_select %p177_p1, %s5383_s26, %s179_s8  }
   0x9   : > { %p5471_p5 = por %p190_p2, %p189_p0  ;;  %p5475_p6 = por %p196_p4, %p195_p3 }
   0xa   : > { %p4078_p7 = scmp.ge.s32.totalorder %s5387_s27, 1  ;;  %p240_p8 = scmp.lt.s32.totalorder %s5387_s27, 3 }
   0xc   : > { %p241_p9 = pnand %p4078_p7, %p240_p8 }
   0xd   : > { %v4089_v0 = vld [vmem:[%s6418_s1 + $0x2] sm:$0x3] (!%p241_p9)  ;;  %vm331_vm0 = vcmask (!%p241_p9), 1041408   ;;  %p272_p10 = scmp.lt.s32.totalorder (!%p241_p9), %s5454_s28, 1  ;;  %v286_v2 = vld [vmem:[%s6418_s1] sm:$0x3] (!%p241_p9) }
   0xe   : > { %244 = sbr.rel (%p241_p9) target bundleno = 845 (0x34d), region = 48  ;;  %5160 = vmatprep.subr.msk.bf16.mxu0 (!%p241_p9), %vm331_vm0, %v4089_v0  ;;  %v333_v1 = vsel (!%p241_p9), %vm331_vm0, %v4089_v0, 0  ;;  %vm318_vm1 = vcmask (!%p241_p9), 31744   ;;  %v433_v3 = vsel (!%p241_p9), %vm331_vm0, %v286_v2, 0  ;;  %v4106_v5 = vld [vmem:[%s6418_s1 + $0x4] sm:$0x3] (!%p241_p9) }
   0xf   : > { %4693 = vmatpush3.bf16.msra.mxu0 (!%p241_p9), %v333_v1  ;;  %vm516_vm2 = vsmask.f32 (!%p241_p9), 3328  ;;  %vm517_vm3 = vsmask.f32 (!%p241_p9), 7440  ;;  %v5237_v34 = vld [vmem:[%s6419_s2 + $0x80] sm:$0xff] (!%p241_p9)   ;;  %v658_v51 = vsel (!%p241_p9), %vm331_vm0, %v4106_v5, 0 }
  0x10   : > { %5161 = vmatprep.subr.msk.bf16.mxu0 (!%p241_p9), %vm331_vm0, %v286_v2  ;;  %vm5528_vm4 = vmor (!%p241_p9), %vm516_vm2, %vm517_vm3  ;;  %4830 = vmatprep.subr.bf16.mxu1 (!%p241_p9), %v5237_v34  ;;  %v4123_v56 = vld [vmem:[%s6418_s1 + $0x6] sm:$0x3] (!%p241_p9)  ;;  %vm1825_vm5 = vcmask (!%p241_p9), 1043456   ;;  %vm1826_vm6 = vsmask.f32 (!%p241_p9), 7938  ;;  %vm1831_vm7 = vcmask (!%p241_p9), 1040384  }
  0x11   : > { %4831 = vmatpush3.bf16.msra.mxu1 (!%p241_p9), %v5237_v34  ;;  %vm1832_vm8 = vsmask.f32 (!%p241_p9), 256  ;;  %vm2330_vm9 = vcmask (!%p241_p9), 1042432   ;;  %vm2331_vm10 = vcmask (!%p241_p9), 1046532   ;;  %vm5878_vm11 = vmand (!%p241_p9), %vm1825_vm5, %vm1826_vm6  ;;  %v5317_v41 = vld [vmem:[%s6419_s2 + $0x220] sm:$0xff] (!%p241_p9)   ;;  %s269_s29 = sand.u32 (!%p241_p9), 1, %s5379_s25  }
  0x12   : > { %vm5885_vm12 = vmand (!%p241_p9), %vm1831_vm7, %vm1832_vm8  ;;  %s4079_s14 = sshll.u32 (!%p241_p9), %s269_s29, 6  ;;  %s4533_s16 = sshll.u32 (!%p241_p9), %s5454_s28, 10 }
  0x13   : > { %vm5910_vm13 = vmor (!%p241_p9), %vm2330_vm9, %vm2331_vm10  ;;  %s6355_s15 = scalar_lea.vmem (!%p241_p9), [#allocation3], %s4079_s14  ;;  %s6367_s20 = scalar_lea.hbm (!%p241_p9), %s6424_s7, %s4533_s16 }
  0x14   : > { %s5390_s23 = smov (!%p241_p9), [#allocation3]  }
  0x15   : > { %s273_s17 = scalar_select %p272_p10, %s5454_s28, 1 }
  0x16   : > { %s6376_s28 = scalar_lea.sflag [#allocation4], %s269_s29  ;;  %s5329_s8 = sshll.u32 %s5390_s23, 4  ;;  %s5330_s8 = int_to_ptr.vmem [resolvable:$false] %s5329_s8 }
  0x17   : > { %s5170_s18 = smul.u32 288, %s273_s17  ;;  %s4013_s17 = sshll.u32 %s6355_s15, 4  ;;  %s6369_s17 = int_to_ptr.vmem [resolvable:$true] %s4013_s17 }
  0x18   : > { %s5325_s22 = scalar_lea.vmem %s6369_s17, 1024  ;;  %s5331_s9 = scalar_lea.vmem %s5330_s8, 2048 }
  0x19   : > { %s5495_s21 = scalar_lea.vmem %s6417_s0, %s5170_s18  ;;  %p5326_p11 = scmp.ne.s32.totalorder %s6369_s17, %s5325_s22 }
  0x1a   : > { %v5213_v4 = vld [vmem:[%s5495_s21 + $0x48] ss:$8 sps:$4 sm:$0xff]   ;;  %v5214_v6 = vld [vmem:[%s5495_s21 + $0x58] ss:$8 sps:$4 sm:$0xff]   ;;  %v501_v11 = vld [vmem:[%s5495_s21 + $0x4] sm:$0x1]  ;;  %p5332_p0 = scmp.lt.s32.totalorder %s6369_s17, %s5330_s8  ;;  %p5333_p1 = scmp.lt.s32.totalorder %s5331_s9, %s5325_s22 }
  0x1b   : > { %4694 = vmatprep.mubr.msk.bf16.mxu0 %vm318_vm1, %v5213_v4  ;;  %v5215_v7 = vld [vmem:[%s5495_s21 + $0x68] ss:$8 sps:$4 sm:$0xff]   ;;  %v5216_v8 = vld [vmem:[%s5495_s21 + $0x78] ss:$8 sps:$4 sm:$0xff]   ;;  %v503_v13 = vld [vmem:[%s5495_s21 + $0xc] sm:$0x1]  ;;  %p5327_p12 = pnand %p5326_p11, %p5471_p5 }
  0x1c   : > { %4695 = vmatmul.mubr.msk.bf16.vlgmr.msra.gmra.mrb[0].mxu0 %vm318_vm1, %v5214_v6  ;;  %v5217_v9 = vld [vmem:[%s5495_s21] ss:$8 sps:$4 sm:$0xff]   ;;  %v529_v17 = vshll.u32 %v501_v11, 16  ;;  %v504_v19 = vld [vmem:[%s5495_s21 + $0x10] sm:$0xf]  ;;  %v543_v23 = vshll.u32 %v503_v13, 16  ;;  %p5334_p2 = por %p5333_p1, %p5332_p0 }
  0x1d   : > { %4703 = vmatpush3.bf16.msra.mxu0 %v433_v3  ;;  %4698 = vmatprep.mubr.msk.bf16.mxu0 %vm318_vm1, %v5215_v7  ;;  %v500_v10 = vld [vmem:[%s5495_s21] sm:$0xf]  ;;  %v502_v12 = vld [vmem:[%s5495_s21 + $0x8] sm:$0xf]  ;;  %v506_v24 = vld [vmem:[%s5495_s21 + $0x18] sm:$0xf]  ;;  %p5328_p13 = pneg %p5327_p12 }
  0x1e   : > { %5162 = vmatprep.subr.msk.bf16.mxu0 %vm331_vm0, %v4106_v5  ;;  %v520_v14 = vshrl.u32 %v500_v10, 16  ;;  %v523_v15 = vshll.u32 %v500_v10, 16  ;;  %v534_v16 = vshrl.u32 %v502_v12, 16  ;;  %v537_v18 = vshll.u32 %v502_v12, 16  ;;  %v505_v26 = vld [vmem:[%s5495_s21 + $0x14] sm:$0x1] }
  0x1f   : > { %v548_v27 = vshrl.u32 %v504_v19, 16  ;;  %v551_v28 = vshll.u32 %v504_v19, 16  ;;  %v5218_v29 = vld [vmem:[%s5495_s21 + $0x10] ss:$8 sps:$4 sm:$0xff]   ;;  %v562_v31 = vshrl.u32 %v506_v24, 16  ;;  %v565_v32 = vshll.u32 %v506_v24, 16  ;;  %p5335_p3 = pnand %p5334_p2, %p5328_p13 }
  0x20   : > { %v522_v20 = vrot.slane %v520_v14, 4  ;;  %v525_v21 = vrot.slane %v523_v15, 5  ;;  %v536_v22 = vrot.slane %v534_v16, 4  ;;  %v539_v25 = vrot.slane %v537_v18, 5  ;;  %v508_v33 = vld [vmem:[%s5495_s21 + $0x20] sm:$0xf] }
  0x21   : > { %v5219_v35 = vld [vmem:[%s5495_s21 + $0x20] ss:$8 sps:$4 sm:$0xff]   ;;  %v531_v36 = vrot.slane %v529_v17, 5  ;;  %v507_v38 = vld [vmem:[%s5495_s21 + $0x1c] sm:$0x1]  ;;  %v550_v39 = vrot.slane %v548_v27, 4 }
  0x22   : > { %v526_v30 = vor.u32 %v525_v21, %v522_v20  ;;  %v540_v37 = vor.u32 %v539_v25, %v536_v22  ;;  %v553_v40 = vrot.slane %v551_v28, 5  ;;  %v545_v43 = vrot.slane %v543_v23, 5  ;;  %v510_v46 = vld [vmem:[%s5495_s21 + $0x28] sm:$0xf]  ;;  %v509_v49 = vld [vmem:[%s5495_s21 + $0x24] sm:$0x1] }
  0x23   : > { %v564_v44 = vrot.slane %v562_v31, 4  ;;  %v567_v45 = vrot.slane %v565_v32, 5  ;;  %v557_v48 = vshll.u32 %v505_v26, 16  ;;  %v576_v50 = vshrl.u32 %v508_v33, 16  ;;  %v511_v53 = vld [vmem:[%s5495_s21 + $0x2c] sm:$0x1] }
  0x24   : > { %4699 = vmatmul.mubr.msk.bf16.gmra.mrb[4].mxu0 %vm318_vm1, %v5216_v8  ;;  %v527_v42 = vrot.slane %v526_v30, 4  ;;  %v541_v47 = vrot.slane %v540_v37, 4  ;;  %v571_v52 = vshll.u32 %v507_v38, 16  ;;  %v579_v54 = vshll.u32 %v508_v33, 16  ;;  %v512_v60 = vld [vmem:[%s5495_s21 + $0x30] sm:$0xf] }
  0x25   : > { %4704 = vmatprep.mubr.msk.bf16.mxu0 %vm318_vm1, %v5217_v9  ;;  %v554_v57 = vor.u32 %v553_v40, %v550_v39  ;;  %v578_v58 = vrot.slane %v576_v50, 4  ;;  %v590_v59 = vshrl.u32 %v510_v46, 16  ;;  %v568_v62 = vor.u32 %v567_v45, %v564_v44  ;;  %v514_v1 = vld [vmem:[%s5495_s21 + $0x38] sm:$0xf]  ;;  %v513_v14 = vld [vmem:[%s5495_s21 + $0x34] sm:$0x1] }
  0x26   : > { %v532_v55 = vsel %vm5528_vm4, %v527_v42, %v531_v36  ;;  %v546_v61 = vsel %vm5528_vm4, %v541_v47, %v545_v43  ;;  %v581_v63 = vrot.slane %v579_v54, 5  ;;  %v585_v0 = vshll.u32 %v509_v49, 16  ;;  %v5220_v6 = vld [vmem:[%s5495_s21 + $0x30] ss:$8 sps:$4 sm:$0xff]   ;;  %v515_v20 = vld [vmem:[%s5495_s21 + $0x3c] sm:$0x1] }
  0x27   : > { %v559_v2 = vrot.slane %v557_v48, 5  ;;  %v592_v3 = vrot.slane %v590_v59, 4  ;;  %v593_v4 = vshll.u32 %v510_v46, 16  ;;  %v599_v5 = vshll.u32 %v511_v53, 16  ;;  %v4140_v44 = vld [vmem:[%s6418_s1 + $0x8] sm:$0x3] }
  0x28   : > { %v573_v7 = vrot.slane %v571_v52, 5  ;;  %v582_v8 = vor.u32 %v581_v63, %v578_v58  ;;  %v604_v9 = vshrl.u32 %v512_v60, 16  ;;  %v607_v10 = vshll.u32 %v512_v60, 16  ;;  %v4149_v45 = vld [vmem:[%s5495_s21 + $0x90] sm:$0xf] }
  0x29   : > { %v4107_v11 = vcombine.low %v532_v55, %v546_v61  ;;  %v555_v12 = vrot.slane %v554_v57, 4  ;;  %v595_v13 = vrot.slane %v593_v4, 5  ;;  %v569_v15 = vrot.slane %v568_v62, 4  ;;  %v4151_v46 = vld [vmem:[%s5495_s21 + $0x98] sm:$0xf] }
  0x2a   : > { %v587_v16 = vrot.slane %v585_v0, 5  ;;  %v601_v17 = vrot.slane %v599_v5, 5  ;;  %v618_v18 = vshrl.u32 %v514_v1, 16  ;;  %v606_v21 = vrot.slane %v604_v9, 4  ;;  %v4150_v49 = vld [vmem:[%s5495_s21 + $0x94] sm:$0x1] }
  0x2b   : > { %v596_v19 = vor.u32 %v595_v13, %v592_v3  ;;  %v609_v22 = vrot.slane %v607_v10, 5  ;;  %v621_v23 = vshll.u32 %v514_v1, 16  ;;  %v583_v24 = vrot.slane %v582_v8, 4  ;;  %v5578_v50 = vld [vmem:[%s6418_s1 + $0xa] sm:$0x3] }
  0x2c   : > { %4705 = vmatmul.mubr.msk.bf16.vlgmr.msra.gmra.mrb[0].mxu0 %vm318_vm1, %v5218_v29  ;;  %v620_v25 = vrot.slane %v618_v18, 4  ;;  %v560_v28 = vsel %vm5528_vm4, %v555_v12, %v559_v2  ;;  %v613_v29 = vshll.u32 %v513_v14, 16  ;;  %v574_v30 = vsel %vm5528_vm4, %v569_v15, %v573_v7  ;;  %v4153_v53 = vld [vmem:[%s5495_s21 + $0xa0] sm:$0xf]  ;;  %v5589_v57 = vld [vmem:[%s6418_s1 + $0xe] sm:$0x3] }
  0x2d   : > { %4713 = vmatpush3.bf16.msra.mxu0 %v658_v51  ;;  %4708 = vmatprep.mubr.msk.bf16.mxu0 %vm318_vm1, %v5219_v35  ;;  %v597_v26 = vrot.slane %v596_v19, 4  ;;  %v623_v27 = vrot.slane %v621_v23, 5  ;;  %v610_v31 = vor.u32 %v609_v22, %v606_v21  ;;  %v627_v33 = vshll.u32 %v515_v20, 16  ;;  %v5221_v59 = vld [vmem:[%s5495_s21 + $0x90] ss:$8 sps:$4 sm:$0xff]  }
  0x2e   : > { %5163 = vmatprep.subr.msk.bf16.mxu0 %vm331_vm0, %v4123_v56  ;;  %v588_v34 = vsel %vm5528_vm4, %v583_v24, %v587_v16  ;;  %v4108_v36 = vcombine.low %v560_v28, %v574_v30  ;;  %v615_v37 = vrot.slane %v613_v29, 5  ;;  %v777_v43 = vsel %vm331_vm0, %v4123_v56, 0  ;;  %v5584_v56 = vld [vmem:[%s6418_s1 + $0xc] sm:$0x3]  ;;  %v5596_v62 = vld [vmem:[%s6418_s1 + $0x10] sm:$0x3] }
  0x2f   : > { %v624_v32 = vor.u32 %v623_v27, %v620_v25  ;;  %v602_v35 = vsel %vm5528_vm4, %v597_v26, %v601_v17  ;;  %v611_v39 = vrot.slane %v610_v31, 4  ;;  %v629_v42 = vrot.slane %v627_v33, 5  ;;  %v4152_v0 = vld [vmem:[%s5495_s21 + $0x9c] sm:$0x1]  ;;  %v4155_v1 = vld [vmem:[%s5495_s21 + $0xa8] sm:$0xf] }
  0x30   : > { %v4109_v38 = vcombine.low %v588_v34, %v602_v35  ;;  %v988_v51 = vshrl.u32 %v4149_v45, 16  ;;  %v991_v52 = vshll.u32 %v4149_v45, 16  ;;  %v1002_v54 = vshrl.u32 %v4151_v46, 16  ;;  %v4154_v5 = vld [vmem:[%s5495_s21 + $0xa4] sm:$0x1] }
  0x31   : > { %v625_v40 = vrot.slane %v624_v32, 4  ;;  %v616_v47 = vsel %vm5528_vm4, %v611_v39, %v615_v37  ;;  %v1005_v55 = vshll.u32 %v4151_v46, 16  ;;  %v896_v60 = vsel %vm331_vm0, %v4140_v44, 0  ;;  %v4156_v14 = vld [vmem:[%s5495_s21 + $0xac] sm:$0x1] }
  0x32   : > { %v997_v61 = vshll.u32 %v4150_v49, 16  ;;  %v5600_v63 = vsel %vm331_vm0, %v5578_v50, 0  ;;  %v1016_v2 = vshrl.u32 %v4153_v53, 16  ;;  %v990_v3 = vrot.slane %v988_v51, 4  ;;  %v4157_v19 = vld [vmem:[%s5495_s21 + $0xb0] sm:$0xf] }
  0x33   : > { %v630_v48 = vsel %vm5528_vm4, %v625_v40, %v629_v42  ;;  %v993_v4 = vrot.slane %v991_v52, 5  ;;  %v5611_v7 = vsel %vm331_vm0, %v5589_v57, 0  ;;  %v1004_v8 = vrot.slane %v1002_v54, 4  ;;  %v5222_v20 = vld [vmem:[%s5495_s21 + $0xa0] ss:$8 sps:$4 sm:$0xff]  }
  0x34   : > { %4709 = vmatmul.mubr.msk.bf16.gmra.mrb[4].mxu0 %vm318_vm1, %v5220_v6  ;;  %v4110_v58 = vcombine.low %v616_v47, %v630_v48  ;;  %v5607_v6 = vsel %vm331_vm0, %v5584_v56, 0  ;;  %v1007_v9 = vrot.slane %v1005_v55, 5  ;;  %v1019_v10 = vshll.u32 %v4153_v53, 16  ;;  %v4158_v22 = vld [vmem:[%s5495_s21 + $0xb4] sm:$0x1] }
  0x35   : > { %4714 = vmatprep.mubr.msk.bf16.mxu0 %vm318_vm1, %v4107_v11  ;;  %v5615_v11 = vsel %vm331_vm0, %v5596_v62, 0  ;;  %v5618_v12 = vrot.slane %v997_v61, 5  ;;  %v1011_v13 = vshll.u32 %v4152_v0, 16  ;;  %v1030_v15 = vshrl.u32 %v4155_v1, 16  ;;  %v4159_v23 = vld [vmem:[%s5495_s21 + $0xb8] sm:$0xf] }
  0x36   : > { %v1033_v16 = vshll.u32 %v4155_v1, 16  ;;  %v1018_v17 = vrot.slane %v1016_v2, 4  ;;  %v1025_v18 = vshll.u32 %v4154_v5, 16  ;;  %v994_v21 = vor.u32 %v993_v4, %v990_v3  ;;  %v4161_v24 = vld [vmem:[%s5495_s21 + $0xc0] sm:$0xf] }
  0x37   : > { %v1008_v25 = vor.u32 %v1007_v9, %v1004_v8  ;;  %v1021_v26 = vrot.slane %v1019_v10, 5  ;;  %v1039_v27 = vshll.u32 %v4156_v14, 16  ;;  %v4163_v28 = vld [vmem:[%s5495_s21 + $0xc8] sm:$0xf]  ;;  %v1032_v29 = vrot.slane %v1030_v15, 4 }
  0x38   : > { %v1035_v30 = vrot.slane %v1033_v16, 5  ;;  %v1044_v31 = vshrl.u32 %v4157_v19, 16  ;;  %v1047_v32 = vshll.u32 %v4157_v19, 16  ;;  %v5223_v33 = vld [vmem:[%s5495_s21 + $0xb0] ss:$8 sps:$4 sm:$0xff]   ;;  %v1058_v34 = vshrl.u32 %v4159_v23, 16 }
  0x39   : > { %v1061_v35 = vshll.u32 %v4159_v23, 16  ;;  %v1075_v37 = vshll.u32 %v4161_v24, 16  ;;  %v5631_v39 = vrot.slane %v1011_v13, 5  ;;  %v1086_v40 = vshrl.u32 %v4163_v28, 16  ;;  %v4160_v46 = vld [vmem:[%s5495_s21 + $0xbc] sm:$0x1] }
  0x3a   : > { %v1089_v42 = vshll.u32 %v4163_v28, 16  ;;  %v5637_v45 = vrot.slane %v1039_v27, 5  ;;  %v1053_v47 = vshll.u32 %v4158_v22, 16  ;;  %v1022_v48 = vor.u32 %v1021_v26, %v1018_v17  ;;  %v4162_v53 = vld [vmem:[%s5495_s21 + $0xc4] sm:$0x1] }
  0x3b   : > { %v1036_v49 = vor.u32 %v1035_v30, %v1032_v29  ;;  %v1046_v51 = vrot.slane %v1044_v31, 4  ;;  %v1049_v52 = vrot.slane %v1047_v32, 5  ;;  %v1060_v54 = vrot.slane %v1058_v34, 4  ;;  %v5224_v61 = vld [vmem:[%s5495_s21 + $0xc0] ss:$8 sps:$4 sm:$0xff]  }
  0x3c   : > { %4715 = vmatmul.mubr.msk.bf16.vlgmr.msra.gmra.mrb[0].mxu0 %vm318_vm1, %v4108_v36  ;;  %v1072_v36 = vshrl.u32 %v4161_v24, 16  ;;  %v1063_v55 = vrot.slane %v1061_v35, 5  ;;  %v1088_v0 = vrot.slane %v1086_v40, 4  ;;  %v1091_v1 = vrot.slane %v1089_v42, 5  ;;  %v5225_v2 = vld [vmem:[%s5495_s21 + $0xd8] ss:$8 sps:$4 sm:$0xff]  }
  0x3d   : > { %4723 = vmatpush3.bf16.msra.mxu0 %v777_v43  ;;  %4718 = vmatprep.mubr.msk.bf16.mxu0 %vm318_vm1, %v4109_v38  ;;  %v5629_v38 = vrot.slane %v994_v21, 4  ;;  %v5633_v43 = vrot.slane %v1008_v25, 4  ;;  %v4164_v3 = vld [vmem:[%s5495_s21 + $0xcc] sm:$0x1]  ;;  %v5648_v4 = vrot.slane %v1022_v48, 4  ;;  %v5650_v5 = vrot.slane %v1036_v49, 4 }
  0x3e   : > { %5164 = vmatprep.subr.msk.bf16.mxu0 %vm331_vm0, %v4140_v44  ;;  %v5635_v44 = vrot.slane %v1025_v18, 5  ;;  %v1050_v8 = vor.u32 %v1049_v52, %v1046_v51  ;;  %v1081_v9 = vshll.u32 %v4162_v53, 16  ;;  %v1064_v10 = vor.u32 %v1063_v55, %v1060_v54  ;;  %v4208_v16 = vld [vmem:[%s5495_s21 + $0x8] sm:$0xf]  ;;  %v4210_v17 = vld [vmem:[%s5495_s21 + $0x10] sm:$0xf] }
  0x3f   : > { %v1092_v14 = vor.u32 %v1091_v1, %v1088_v0  ;;  %v1095_v15 = vshll.u32 %v4164_v3, 16  ;;  %v4211_v18 = vld [vmem:[%s5495_s21 + $0x14] sm:$0x1]  ;;  %v1456_v19 = vshrl.u32 %v4208_v16, 16  ;;  %v5657_v21 = vrot.slane %v1053_v47, 5 }
  0x40   : > { %v1470_v24 = vshrl.u32 %v4210_v17, 16  ;;  %v4212_v25 = vld [vmem:[%s5495_s21 + $0x18] sm:$0xf]  ;;  %v5663_v26 = vrot.slane %v1050_v8, 4  ;;  %v5665_v27 = vrot.slane %v1081_v9, 5  ;;  %v1473_v28 = vshll.u32 %v4210_v17, 16 }
  0x41   : > { %v1479_v29 = vshll.u32 %v4211_v18, 16  ;;  %v4214_v30 = vld [vmem:[%s5495_s21 + $0x20] sm:$0xf]  ;;  %v5226_v31 = vld [vmem:[%s5495_s21 + $0xe8] ss:$8 sps:$4 sm:$0xff]   ;;  %v5669_v32 = vrot.slane %v1064_v10, 4  ;;  %v1000_v10 = vsel %vm5528_vm4, %v5629_v38, %v5618_v12 }
  0x42   : > { %v5673_v34 = vrot.slane %v1092_v14, 4  ;;  %v5675_v35 = vrot.slane %v1095_v15, 5  ;;  %v4213_v42 = vld [vmem:[%s5495_s21 + $0x1c] sm:$0x1]  ;;  %v1487_v47 = vshll.u32 %v4212_v25, 16  ;;  %v1472_v49 = vrot.slane %v1470_v24, 4 }
  0x43   : > { %v1498_v51 = vshrl.u32 %v4214_v30, 16  ;;  %v1501_v52 = vshll.u32 %v4214_v30, 16  ;;  %v4216_v53 = vld [vmem:[%s5495_s21 + $0x28] sm:$0xf]  ;;  %v1475_v54 = vrot.slane %v1473_v28, 5  ;;  %v5682_v55 = vrot.slane %v1479_v29, 5 }
  0x44   : > { %4719 = vmatmul.mubr.msk.bf16.gmra.mrb[4].mxu0 %vm318_vm1, %v4110_v58  ;;  %v1074_v58 = vrot.slane %v1072_v36, 4  ;;  %v5227_v36 = vld [vmem:[%s5495_s21 + $0xf8] ss:$8 sps:$4 sm:$0xff]   ;;  %v1489_v0 = vrot.slane %v1487_v47, 5  ;;  %v1512_v8 = vshrl.u32 %v4216_v53, 16  ;;  %v1515_v9 = vshll.u32 %v4216_v53, 16 }
  0x45   : > { %4724 = vmatprep.mubr.msk.bf16.mxu0 %vm318_vm1, %v5221_v59  ;;  %v1077_v59 = vrot.slane %v1075_v37, 5  ;;  %v1458_v37 = vrot.slane %v1456_v19, 4  ;;  %v1500_v1 = vrot.slane %v1498_v51, 4  ;;  %v4217_v14 = vld [vmem:[%s5495_s21 + $0x2c] sm:$0x1]  ;;  %v1476_v17 = vor.u32 %v1475_v54, %v1472_v49 }
  0x46   : > { %v4219_v15 = vld [vmem:[%s5495_s21 + $0x34] sm:$0x1]  ;;  %v1514_v18 = vrot.slane %v1512_v8, 4  ;;  %v1517_v19 = vrot.slane %v1515_v9, 5  ;;  %v1521_v29 = vshll.u32 %v4217_v14, 16 }
  0x47   : > { %v1078_v13 = vor.u32 %v1077_v59, %v1074_v58  ;;  %v4215_v58 = vld [vmem:[%s5495_s21 + $0x24] sm:$0x1]  ;;  %v4218_v59 = vld [vmem:[%s5495_s21 + $0x30] sm:$0xf]  ;;  %v4221_v9 = vld [vmem:[%s5495_s21 + $0x3c] sm:$0x1] }
  0x48   : > { %v1518_v28 = vor.u32 %v1517_v19, %v1514_v18  ;;  %v5231_v8 = vld [vmem:[%s5495_s21 + $0x28] ss:$8 sps:$4 sm:$0xff]   ;;  %v1549_v14 = vshll.u32 %v4221_v9, 16 }
  0x4a   : > { %v1519_v51 = vrot.slane %v1518_v28, 4  ;;  %v1551_v19 = vrot.slane %v1549_v14, 5  ;;  %v5238_v28 = vld [vmem:[%s6419_s2 + $0x88] sm:$0xff]  }
  0x4b   : > { %4832 = vmatprep.subr.bf16.mxu1 %v5238_v28 }
  0x4c   : > { %4725 = vmatmul.mubr.msk.bf16.vlgmr.msra.gmra.mrb[0].mxu0 %vm318_vm1, %v5222_v20  ;;  %v1459_v20 = vshll.u32 %v4208_v16, 16  ;;  %v1526_v16 = vshrl.u32 %v4218_v59, 16  ;;  %4833 = vmatpush3.bf16.msra.mxu1 %v5238_v28 }
  0x4d   : > { %4733 = vmatpush3.bf16.msra.mxu0 %v896_v60  ;;  %4728 = vmatprep.mubr.msk.bf16.mxu0 %vm318_vm1, %v5223_v33  ;;  %v1067_v60 = vshll.u32 %v4160_v46, 16  ;;  %v5671_v33 = vrot.slane %v1078_v13, 4  ;;  %v1484_v46 = vshrl.u32 %v4212_v25, 16  ;;  %v1507_v13 = vshll.u32 %v4215_v58, 16 }
  0x4e   : > { %5165 = vmatprep.subr.msk.bf16.mxu0 %vm331_vm0, %v5578_v50  ;;  %v4209_v50 = vld [vmem:[%s5495_s21 + $0xc] sm:$0x1]  ;;  %v1461_v40 = vrot.slane %v1459_v20, 5  ;;  %v4220_v20 = vld [vmem:[%s5495_s21 + $0x38] sm:$0xf]  ;;  %v1528_v24 = vrot.slane %v1526_v16, 4  ;;  %v1028_v58 = vsel %vm5528_vm4, %v5648_v4, %v5635_v44 }
  0x4f   : > { %v5659_v22 = vrot.slane %v1067_v60, 5  ;;  %v1465_v23 = vshll.u32 %v4209_v50, 16  ;;  %v1493_v60 = vshll.u32 %v4213_v42, 16  ;;  %v1014_v50 = vsel %vm5528_vm4, %v5633_v43, %v5631_v39  ;;  %v4222_v42 = vld [vmem:[%s5495_s21 + $0x40] sm:$0xf] }
  0x50   : > { %v1462_v3 = vor.u32 %v1461_v40, %v1458_v37  ;;  %v1535_v43 = vshll.u32 %v4219_v15, 16  ;;  %v1477_v37 = vrot.slane %v1476_v17, 4  ;;  %v5707_v40 = vrot.slane %v1507_v13, 5 }
  0x51   : > { %v5679_v48 = vrot.slane %v1465_v23, 5  ;;  %v5228_v23 = vld [vmem:[%s5495_s21 + $0x108] ss:$8 sps:$4 sm:$0xff]   ;;  %v5705_v30 = vrot.slane %v1493_v60, 5  ;;  %v1543_v49 = vshll.u32 %v4220_v20, 16 }
  0x52   : > { %v5703_v25 = vrot.slane %v1462_v3, 4  ;;  %v1537_v53 = vrot.slane %v1535_v43, 5  ;;  %v5241_v43 = vld [vmem:[%s6419_s2 + $0x48] sm:$0xff]  }
  0x53   : > { %v1545_v44 = vrot.slane %v1543_v49, 5  ;;  %v5250_v49 = vld [vmem:[%s6419_s2 + $0xb8] sm:$0xff]  }
  0x54   : > { %4729 = vmatmul.mubr.msk.bf16.gmra.mrb[4].mxu0 %vm318_vm1, %v5224_v61  ;;  %v1486_v61 = vrot.slane %v1484_v46, 4 }
  0x55   : > { %4734 = vmatprep.mubr.msk.bf16.mxu0 %vm318_vm1, %v5225_v2  ;;  %v1503_v2 = vrot.slane %v1501_v52, 5  ;;  %v1523_v52 = vrot.slane %v1521_v29, 5  ;;  %v5239_v29 = vld [vmem:[%s6419_s2 + $0x40] sm:$0xff]  }
  0x56   : > { %v1490_v12 = vor.u32 %v1489_v0, %v1486_v61  ;;  %v1554_v61 = vshrl.u32 %v4222_v42, 16  ;;  %v1557_v0 = vshll.u32 %v4222_v42, 16  ;;  %v5246_v42 = vld [vmem:[%s6419_s2 + $0xa8] sm:$0xff]  }
  0x57   : > { %v1504_v38 = vor.u32 %v1503_v2, %v1500_v1  ;;  %v1056_v1 = vsel %vm5528_vm4, %v5663_v26, %v5657_v21  ;;  %v1070_v2 = vsel %vm5528_vm4, %v5669_v32, %v5659_v22  ;;  %v1084_v21 = vsel %vm5528_vm4, %v5671_v33, %v5665_v27  ;;  %v5229_v26 = vld [vmem:[%s5495_s21 + $0x8] ss:$8 sps:$4 sm:$0xff]   ;;  %v5230_v32 = vld [vmem:[%s5495_s21 + $0x18] ss:$8 sps:$4 sm:$0xff]  }
  0x58   : > { %v5710_v46 = vrot.slane %v1490_v12, 4  ;;  %v4168_v60 = vcombine.low %v1056_v1, %v1070_v2  ;;  %v1098_v22 = vsel %vm5528_vm4, %v5673_v34, %v5675_v35  ;;  %v5232_v27 = vld [vmem:[%s5495_s21 + $0x38] ss:$8 sps:$4 sm:$0xff]   ;;  %v1468_v35 = vsel %vm5528_vm4, %v5703_v25, %v5679_v48 }
  0x59   : > { %v5234_v33 = vld [vmem:[%s5495_s21 + $0x60] ss:$8 sps:$4 sm:$0xff]   ;;  %v5235_v34 = vld [vmem:[%s5495_s21 + $0x70] ss:$8 sps:$4 sm:$0xff]  }
  0x5c   : > { %4735 = vmatmul.mubr.msk.bf16.vlgmr.msra.gmra.mrb[0].mxu0 %vm318_vm1, %v5226_v31  ;;  %v1540_v31 = vshrl.u32 %v4220_v20, 16 }
  0x5d   : > { %4743 = vmatpush3.bf16.msra.mxu0 %v5600_v63  ;;  %4738 = vmatprep.mubr.msk.bf16.mxu0 %vm318_vm1, %v5227_v36  ;;  %v1529_v63 = vshll.u32 %v4218_v59, 16  ;;  %v4166_v36 = vcombine.low %v1000_v10, %v1014_v50  ;;  %v1042_v59 = vsel %vm5528_vm4, %v5650_v5, %v5637_v45  ;;  %v1556_v45 = vrot.slane %v1554_v61, 4  ;;  %v4223_v10 = vld [vmem:[%s5495_s21 + $0x44] sm:$0x1] }
  0x5e   : > { %5166 = vmatprep.subr.msk.bf16.mxu0 %vm331_vm0, %v5584_v56  ;;  %v5712_v56 = vrot.slane %v1504_v38, 4  ;;  %v1542_v54 = vrot.slane %v1540_v31, 4  ;;  %v4167_v4 = vcombine.low %v1028_v58, %v1042_v59  ;;  %v1559_v5 = vrot.slane %v1557_v0, 5  ;;  %v5242_v31 = vld [vmem:[%s6419_s2 + $0x98] sm:$0xff]   ;;  %v5859_v0 = vld [vmem:[%s6421_s4] ss:$0 sm:$0xff] }
  0x5f   : > { %v1531_v39 = vrot.slane %v1529_v63, 5  ;;  %v1563_v16 = vshll.u32 %v4223_v10, 16  ;;  %v1524_v50 = vsel %vm5528_vm4, %v1519_v51, %v1523_v52  ;;  %v5251_v51 = vld [vmem:[%s6419_s2 + $0x70] sm:$0xff]   ;;  %v5840_v52 = vld [vmem:[%s6419_s2 + $0xc0] sm:$0xff]  }
  0x60   : > { %v1510_v48 = vsel %vm5528_vm4, %v5712_v56, %v5707_v40  ;;  %v1546_v15 = vor.u32 %v1545_v44, %v1542_v54  ;;  %v5245_v40 = vld [vmem:[%s6419_s2 + $0x58] sm:$0xff]   ;;  %v5248_v56 = vld [vmem:[%s6419_s2 + $0xb0] sm:$0xff]   ;;  %v5849_v54 = vld [vmem:[%s6419_s2] sm:$0xff]  }
  0x61   : > { %v1532_v47 = vor.u32 %v1531_v39, %v1528_v24  ;;  %v1565_v38 = vrot.slane %v1563_v16, 5  ;;  %v5389_v39 = vmov 0  }
  0x62   : > { %1698 = vst [vmem:[#allocation2 + $0x18] sm:$0xf] %v5389_v39  ;;  %1699 = vst [vmem:[#allocation2 + $0x1c] sm:$0x1] %v5389_v39 }
  0x63   : > { %v1533_v3 = vrot.slane %v1532_v47, 4  ;;  %1692 = vst [vmem:[#allocation2] sm:$0xf] %v5389_v39  ;;  %1693 = vst [vmem:[#allocation2 + $0x4] sm:$0x1] %v5389_v39  ;;  %v5249_v47 = vld [vmem:[%s6419_s2 + $0x68] sm:$0xff]  }
  0x64   : > { %4739 = vmatmul.mubr.msk.bf16.gmra.mrb[4].mxu0 %vm318_vm1, %v5228_v23  ;;  %v1547_v23 = vrot.slane %v1546_v15, 4  ;;  %1694 = vst [vmem:[#allocation2 + $0x8] sm:$0xf] %v5389_v39  ;;  %1695 = vst [vmem:[#allocation2 + $0xc] sm:$0x1] %v5389_v39 }
  0x65   : > { %4744 = vmatprep.mubr.msk.bf16.mxu0 %vm318_vm1, %v4166_v36  ;;  %v1538_v17 = vsel %vm5528_vm4, %v1533_v3, %v1537_v53  ;;  %1696 = vst [vmem:[#allocation2 + $0x10] sm:$0xf] %v5389_v39  ;;  %1697 = vst [vmem:[#allocation2 + $0x14] sm:$0x1] %v5389_v39  ;;  %v5243_v36 = vld [vmem:[%s6419_s2 + $0x50] sm:$0xff]   ;;  %v5253_v53 = vld [vmem:[%s6419_s2 + $0x78] sm:$0xff]  }
  0x66   : > { %v4227_v20 = vcombine.low %v1524_v50, %v1538_v17  ;;  %v1552_v24 = vsel %vm5528_vm4, %v1547_v23, %v1551_v19  ;;  %1700 = vst [vmem:[#allocation2 + $0x20] sm:$0xf] %v5389_v39  ;;  %1701 = vst [vmem:[#allocation2 + $0x24] sm:$0x1] %v5389_v39 }
  0x67   : > { %1702 = vst [vmem:[#allocation2 + $0x28] sm:$0xf] %v5389_v39  ;;  %1703 = vst [vmem:[#allocation2 + $0x2c] sm:$0x1] %v5389_v39 }
  0x68   : > { %1704 = vst [vmem:[#allocation2 + $0x30] sm:$0xf] %v5389_v39  ;;  %1705 = vst [vmem:[#allocation2 + $0x34] sm:$0x1] %v5389_v39 }
  0x69   : > { %1706 = vst [vmem:[#allocation2 + $0x38] sm:$0xf] %v5389_v39  ;;  %1707 = vst [vmem:[#allocation2 + $0x3c] sm:$0x1] %v5389_v39  ;;  %v1843_v15 = vld [vmem:[#allocation2 + $0x18] sm:$0xf] }
  0x6a   : > { %1708 = vst [vmem:[#allocation2 + $0x40] sm:$0xf] %v5389_v39  ;;  %1709 = vst [vmem:[#allocation2 + $0x44] sm:$0x1] %v5389_v39  ;;  %v5852_v58 = vld [vmem:[#allocation2] sm:$0xf] }
  0x6b   : > { %1710 = vst [vmem:[#allocation2 + $0x48] sm:$0xf] %v5389_v39  ;;  %1711 = vst [vmem:[#allocation2 + $0x4c] sm:$0x1] %v5389_v39  ;;  %v1912_v59 = vshrl.u32 %v5852_v58, 16  ;;  %v1915_v61 = vshll.u32 %v5852_v58, 16 }
  0x6c   : > { %4745 = vmatmul.mubr.msk.bf16.vlgmr.msra.gmra.mrb[0].mxu0 %vm318_vm1, %v4167_v4  ;;  %v1828_v23 = vld [vmem:[#allocation2 + $0x8] sm:$0xf] }
  0x6d   : > { %4753 = vmatpush3.bf16.msra.mxu0 %v5607_v6  ;;  %4748 = vmatprep.mubr.msk.bf16.mxu0 %vm318_vm1, %v4168_v60  ;;  %v4169_v6 = vcombine.low %v1084_v21, %v1098_v22  ;;  %v1914_v1 = vrot.slane %v1912_v59, 4  ;;  %v1917_v2 = vrot.slane %v1915_v61, 5 }
  0x6e   : > { %5167 = vmatprep.subr.msk.bf16.mxu0 %vm331_vm0, %v5589_v57  ;;  %v5233_v57 = vld [vmem:[%s5495_s21 + $0x50] ss:$8 sps:$4 sm:$0xff]  }
  0x74   : > { %4749 = vmatmul.mubr.msk.bf16.gmra.mrb[4].mxu0 %vm318_vm1, %v4169_v6 }
  0x75   : > { %4754 = vmatprep.mubr.msk.bf16.mxu0 %vm318_vm1, %v5229_v26 }
  0x7c   : > { %4755 = vmatmul.mubr.msk.bf16.vlgmr.msra.gmra.mrb[0].mxu0 %vm318_vm1, %v5230_v32  ;;  %v5867_v32 = vld [vmem:[#allocation2] sm:$0xe] }
  0x7d   : > { %4763 = vmatpush3.bf16.msra.mxu0 %v5611_v7  ;;  %4758 = vmatprep.mubr.msk.bf16.mxu0 %vm318_vm1, %v5231_v8  ;;  %v5236_v7 = vld [vmem:[%s5495_s21 + $0x80] ss:$8 sps:$4 sm:$0xff]   ;;  %v1918_v8 = vor.u32 %v1917_v2, %v1914_v1 }
  0x7e   : > { %5168 = vmatprep.subr.msk.bf16.mxu0 %vm331_vm0, %v5596_v62  ;;  %v1482_v62 = vsel %vm5528_vm4, %v1477_v37, %v5682_v55  ;;  %v1560_v55 = vor.u32 %v1559_v5, %v1556_v45  ;;  %v5244_v37 = vld [vmem:[%s6419_s2 + $0xa0] sm:$0xff]  }
  0x7f   : > { %v4225_v13 = vcombine.low %v1468_v35, %v1482_v62  ;;  %v5863_v5 = vld [vmem:[#allocation2 + $0x4] sm:$0x1]  ;;  %v4282_v62 = vrot.slane %v5867_v32, 9  ;;  %v5874_v14 = vrot.slane %v1918_v8, 4 }
  0x80   : > { %v1561_v12 = vrot.slane %v1560_v55, 4  ;;  %v1921_v6 = vshll.u32 %v5863_v5, 16  ;;  %v2335_v9 = vrot.slane %v5863_v5, 5  ;;  %v1846_v55 = vld [vmem:[#allocation2 + $0x1c] sm:$0x1] }
  0x82   : > { %v1566_v63 = vsel %vm5528_vm4, %v1561_v12, %v1565_v38 }
  0x83   : > { %v4228_v25 = vcombine.low %v1552_v24, %v1566_v63 }
  0x84   : > { %4759 = vmatmul.mubr.msk.bf16.gmra.mrb[4].mxu0 %vm318_vm1, %v5232_v27 }
  0x85   : > { %4764 = vmatprep.mubr.msk.bf16.mxu0 %vm318_vm1, %v5233_v57 }
  0x8c   : > { %4765 = vmatmul.mubr.msk.bf16.vlgmr.msra.gmra.mrb[0].mxu0 %vm318_vm1, %v5234_v33 }
  0x8d   : > { %4773 = vmatpush3.bf16.msra.mxu0 %v5615_v11  ;;  %4768 = vmatprep.mubr.msk.bf16.mxu0 %vm318_vm1, %v5235_v34  ;;  %v1496_v11 = vsel %vm5528_vm4, %v5710_v46, %v5705_v30  ;;  %v5240_v30 = vld [vmem:[%s6419_s2 + $0x90] sm:$0xff]   ;;  %v5247_v46 = vld [vmem:[%s6419_s2 + $0x60] sm:$0xff]  }
  0x8e   : > { %v4226_v18 = vcombine.low %v1496_v11, %v1510_v48  ;;  %4782 = vmatprep.subr.bf16.mxu0 %v5239_v29  ;;  %4834 = vmatprep.subr.bf16.mxu1 %v5240_v30  ;;  %v5872_v11 = vrot.slane %v1921_v6, 5 }
  0x8f   : > { %4835 = vmatpush3.bf16.msra.mxu1 %v5240_v30 }
  0x90   : > { %4836 = vmatprep.subr.bf16.mxu1 %v5242_v31 }
  0x93   : > { %4837 = vmatpush3.bf16.msra.mxu1 %v5242_v31 }
  0x94   : > { %4769 = vmatmul.mubr.msk.bf16.gmra.mrb[4].mxu0 %vm318_vm1, %v5236_v7  ;;  %4838 = vmatprep.subr.bf16.mxu1 %v5244_v37 }
  0x95   : > { %4774 = vmatprep.mubr.msk.bf16.mxu0 %vm318_vm1, %v4225_v13 }
  0x97   : > { %4839 = vmatpush3.bf16.msra.mxu1 %v5244_v37 }
  0x98   : > { %4840 = vmatprep.subr.bf16.mxu1 %v5246_v42 }
  0x9b   : > { %4841 = vmatpush3.bf16.msra.mxu1 %v5246_v42  ;;  %v1849_v42 = vld [vmem:[#allocation2 + $0x20] sm:$0xf] }
  0x9c   : > { %4775 = vmatmul.mubr.msk.bf16.vlgmr.msra.gmra.mrb[0].mxu0 %vm318_vm1, %v4226_v18  ;;  %4842 = vmatprep.subr.bf16.mxu1 %v5248_v56 }
  0x9d   : > { %4778 = vmatprep.mubr.msk.bf16.mxu0 %vm318_vm1, %v4227_v20  ;;  %4783 = vmatpush3.bf16.msra.mxu0 %v5239_v29  ;;  %v1834_v29 = vld [vmem:[#allocation2 + $0xc] sm:$0x1] }
  0x9e   : > { %4784 = vmatprep.subr.bf16.mxu0 %v5241_v43 }
  0x9f   : > { %4843 = vmatpush3.bf16.msra.mxu1 %v5248_v56 }
  0xa0   : > { %4844 = vmatprep.subr.bf16.mxu1 %v5250_v49 }
  0xa1   : > { %4785 = vmatpush3.bf16.msra.mxu0 %v5241_v43 }
  0xa2   : > { %4786 = vmatprep.subr.bf16.mxu0 %v5243_v36 }
  0xa3   : > { %4845 = vmatpush3.bf16.msra.mxu1 %v5250_v49 }
  0xa4   : > { %4779 = vmatmul.mubr.msk.bf16.gmra.mrb[4].mxu0 %vm318_vm1, %v4228_v25  ;;  %4854 = vmatprep.subr.bf16.mxu1 %v5840_v52 }
  0xa5   : > { %4787 = vmatpush3.bf16.msra.mxu0 %v5243_v36 }
  0xa6   : > { %4788 = vmatprep.subr.bf16.mxu0 %v5245_v40 }
  0xa9   : > { %4789 = vmatpush3.bf16.msra.mxu0 %v5245_v40 }
  0xaa   : > { %4790 = vmatprep.subr.bf16.mxu0 %v5247_v46 }
  0xad   : > { %4791 = vmatpush3.bf16.msra.mxu0 %v5247_v46 }
  0xae   : > { %4792 = vmatprep.subr.bf16.mxu0 %v5249_v47 }
  0xb1   : > { %4793 = vmatpush3.bf16.msra.mxu0 %v5249_v47 }
  0xb2   : > { %4794 = vmatprep.subr.bf16.mxu0 %v5251_v51 }
  0xb5   : > { %4795 = vmatpush3.bf16.msra.mxu0 %v5251_v51  ;;  %v1852_v51 = vld [vmem:[#allocation2 + $0x24] sm:$0x1] }
  0xb6   : > { %4796 = vmatprep.subr.bf16.mxu0 %v5253_v53 }
  0xb9   : > { %4797 = vmatpush3.bf16.msra.mxu0 %v5253_v53 }
  0xba   : > { %4806 = vmatprep.subr.bf16.mxu0 %v5849_v54 }
 0x16f   : > { %v4776_v3 = vpop.f32.mrb[0].mxu0 }
 0x170   : > { %v1678_v44 = vadd.f32 %v4776_v3, %v5859_v0  ;;  %v1630_v4 = vpop.f32.mrb[1].mxu0 }
 0x171   : > { %v1676_v60 = vadd.f32 %v5859_v0, %v1630_v4  ;;  %v4777_v45 = vpop.f32.mrb[2].mxu0  ;;  %v1840_v4 = vld [vmem:[#allocation2 + $0x14] sm:$0x1] }
 0x172   : > { %v1686_v21 = vmax.f32 %v1678_v44, 0.0  ;;  %v1679_v22 = vadd.f32 %v4777_v45, %v5859_v0  ;;  %v1633_v26 = vpop.f32.mrb[3].mxu0  ;;  %v1837_v44 = vld [vmem:[#allocation2 + $0x10] sm:$0xf] }
 0x173   : > { %v1684_v27 = vmax.f32 %v1676_v60, 0.0  ;;  %v1677_v57 = vadd.f32 %v5859_v0, %v1633_v26 }
 0x174   : > { %v4527_v33 = vpack.c.bf16 %v1686_v21, %v1686_v21  ;;  %v1687_v34 = vmax.f32 %v1679_v22, 0.0 }
 0x175   : > { %v4525_v7 = vpack.c.bf16 %v1684_v27, %v1684_v27  ;;  %v1685_v35 = vmax.f32 %v1677_v57, 0.0 }
 0x176   : > { %v1761_v10 = vshrl.u32 %v4527_v33, 16  ;;  %v4528_v13 = vpack.c.bf16 %v1687_v34, %v1687_v34  ;;  %v1764_v48 = vshll.u32 %v4527_v33, 16 }
 0x177   : > { %v1745_v16 = vshrl.u32 %v4525_v7, 16  ;;  %v1748_v50 = vshll.u32 %v4525_v7, 16  ;;  %v4526_v17 = vpack.c.bf16 %v1685_v35, %v1685_v35  ;;  %v4780_v18 = vpop.f32.mrb[4].mxu0 }
 0x178   : > { %v1763_v19 = vrot.slane %v1761_v10, 7  ;;  %v1769_v12 = vshrl.u32 %v4528_v13, 16  ;;  %v1772_v38 = vshll.u32 %v4528_v13, 16  ;;  %v1682_v24 = vadd.f32 %v4780_v18, %v5859_v0  ;;  %v1646_v63 = vpop.f32.mrb[5].mxu0 }
 0x179   : > { %v1747_v28 = vrot.slane %v1745_v16, 7  ;;  %v1753_v30 = vshrl.u32 %v4526_v17, 16  ;;  %v1756_v39 = vshll.u32 %v4526_v17, 16  ;;  %v1680_v43 = vadd.f32 %v5859_v0, %v1646_v63  ;;  %v4781_v31 = vpop.f32.mrb[6].mxu0 }
 0x17a   : > { %v1766_v36 = vor.u32 %v1764_v48, %v1763_v19  ;;  %v1767_v37 = vrot.slane %v1763_v19, 4  ;;  %v1771_v40 = vrot.slane %v1769_v12, 7  ;;  %v1690_v46 = vmax.f32 %v1682_v24, 0.0  ;;  %v1649_v56 = vpop.f32.mrb[7].mxu0  ;;  %v1870_v19 = vld [vmem:[#allocation2 + $0x3c] sm:$0x1] }
 0x17b   : > { %v1750_v47 = vor.u32 %v1748_v50, %v1747_v28  ;;  %v1751_v49 = vrot.slane %v1747_v28, 4  ;;  %v1755_v53 = vrot.slane %v1753_v30, 7  ;;  %v1688_v59 = vmax.f32 %v1680_v43, 0.0  ;;  %v1867_v50 = vld [vmem:[#allocation2 + $0x38] sm:$0xf] }
 0x17c   : > { %v1844_v61 = vsel %vm5878_vm11, %v1766_v36, %v1843_v15  ;;  %v1847_v1 = vsel %vm5885_vm12, %v1767_v37, %v1846_v55  ;;  %v1774_v2 = vor.u32 %v1772_v38, %v1771_v40  ;;  %v1775_v3 = vrot.slane %v1771_v40, 4 }
 0x17d   : > { %1845 = vst [vmem:[#allocation2 + $0x18] sm:$0xf] %v1844_v61  ;;  %1848 = vst [vmem:[#allocation2 + $0x1c] sm:$0x1] %v1847_v1  ;;  %v1829_v60 = vsel %vm5878_vm11, %v1750_v47, %v1828_v23  ;;  %v1835_v45 = vsel %vm5885_vm12, %v1751_v49, %v1834_v29  ;;  %v1758_v21 = vor.u32 %v1756_v39, %v1755_v53  ;;  %v1759_v22 = vrot.slane %v1755_v53, 4 }
 0x17e   : > { %1830 = vst [vmem:[#allocation2 + $0x8] sm:$0xf] %v1829_v60  ;;  %1836 = vst [vmem:[#allocation2 + $0xc] sm:$0x1] %v1835_v45  ;;  %v1850_v26 = vsel %vm5878_vm11, %v1774_v2, %v1849_v42  ;;  %v1853_v6 = vsel %vm5885_vm12, %v1775_v3, %v1852_v51  ;;  %v4531_v8 = vpack.c.bf16 %v1690_v46, %v1690_v46  ;;  %v1855_v23 = vld [vmem:[#allocation2 + $0x28] sm:$0xf] }
 0x17f   : > { %v4529_v27 = vpack.c.bf16 %v1688_v59, %v1688_v59  ;;  %1851 = vst [vmem:[#allocation2 + $0x20] sm:$0xf] %v1850_v26  ;;  %1854 = vst [vmem:[#allocation2 + $0x24] sm:$0x1] %v1853_v6  ;;  %v1838_v57 = vsel %vm5878_vm11, %v1758_v21, %v1837_v44  ;;  %v1841_v33 = vsel %vm5885_vm12, %v1759_v22, %v1840_v4  ;;  %v1873_v46 = vld [vmem:[#allocation2 + $0x40] sm:$0xf] }
 0x180   : > { %v1683_v34 = vadd.f32 %v4781_v31, %v5859_v0  ;;  %v1681_v7 = vadd.f32 %v5859_v0, %v1649_v56  ;;  %1839 = vst [vmem:[#allocation2 + $0x10] sm:$0xf] %v1838_v57  ;;  %1842 = vst [vmem:[#allocation2 + $0x14] sm:$0x1] %v1841_v33  ;;  %v1793_v35 = vshrl.u32 %v4531_v8, 16  ;;  %v1796_v16 = vshll.u32 %v4531_v8, 16 }
 0x181   : > { %v1777_v10 = vshrl.u32 %v4529_v27, 16  ;;  %v1780_v18 = vshll.u32 %v4529_v27, 16  ;;  %v1858_v0 = vld [vmem:[#allocation2 + $0x2c] sm:$0x1]  ;;  %v5920_v24 = vsel %vm5910_vm13, %v4282_v62, %v2335_v9  ;;  %v1924_v63 = vsel %vm5528_vm4, %v5874_v14, %v5872_v11  ;;  %v1876_v56 = vld [vmem:[#allocation2 + $0x44] sm:$0x1] }
 0x182   : > { %v1691_v48 = vmax.f32 %v1683_v34, 0.0  ;;  %v1689_v15 = vmax.f32 %v1681_v7, 0.0  ;;  %v1795_v55 = vrot.slane %v1793_v35, 7  ;;  %v1861_v47 = vld [vmem:[#allocation2 + $0x30] sm:$0xf] }
 0x183   : > { %v1779_v17 = vrot.slane %v1777_v10, 7  ;;  %v1864_v49 = vld [vmem:[#allocation2 + $0x34] sm:$0x1] }
 0x184   : > { %v4532_v12 = vpack.c.bf16 %v1691_v48, %v1691_v48  ;;  %v4530_v38 = vpack.c.bf16 %v1689_v15, %v1689_v15  ;;  %v1798_v28 = vor.u32 %v1796_v16, %v1795_v55  ;;  %v1799_v29 = vrot.slane %v1795_v55, 4  ;;  %v5926_v43 = vld [vmem:[#allocation2 + $0x1c] sm:$0x1]  ;;  %v2309_v60 = vld [vmem:[#allocation2 + $0x18] sm:$0xe] }
 0x185   : > { %v1782_v30 = vor.u32 %v1780_v18, %v1779_v17  ;;  %v1783_v39 = vrot.slane %v1779_v17, 4  ;;  %v1904_v32 = vld [vmem:[#allocation2 + $0xc] sm:$0x1]  ;;  %v2307_v51 = vld [vmem:[#allocation2 + $0x8] sm:$0xe]  ;;  %v1963_v4 = vshll.u32 %v5926_v43, 16 }
 0x186   : > { %v1801_v31 = vshrl.u32 %v4532_v12, 16  ;;  %v1804_v36 = vshll.u32 %v4532_v12, 16  ;;  %v1785_v5 = vshrl.u32 %v4530_v38, 16  ;;  %v1788_v37 = vshll.u32 %v4530_v38, 16  ;;  %v5937_v27 = vld [vmem:[#allocation2 + $0x8] sm:$0xf] }
 0x187   : > { %v1868_v62 = vsel %vm5878_vm11, %v1798_v28, %v1867_v50  ;;  %v1871_v9 = vsel %vm5885_vm12, %v1799_v29, %v1870_v19  ;;  %v1856_v40 = vsel %vm5878_vm11, %v1782_v30, %v1855_v23  ;;  %v1859_v42 = vsel %vm5885_vm12, %v1783_v39, %v1858_v0  ;;  %v1905_v2 = vld [vmem:[#allocation2 + $0x14] sm:$0x1]  ;;  %v2308_v8 = vld [vmem:[#allocation2 + $0x10] sm:$0xe]  ;;  %v5957_v16 = vld [vmem:[#allocation2 + $0x18] sm:$0xf] }
 0x188   : > { %1869 = vst [vmem:[#allocation2 + $0x38] sm:$0xf] %v1868_v62  ;;  %1872 = vst [vmem:[#allocation2 + $0x3c] sm:$0x1] %v1871_v9  ;;  %v1803_v53 = vrot.slane %v1801_v31, 7  ;;  %v1787_v59 = vrot.slane %v1785_v5, 7 }
 0x189   : > { %1857 = vst [vmem:[#allocation2 + $0x28] sm:$0xf] %v1856_v40  ;;  %1860 = vst [vmem:[#allocation2 + $0x2c] sm:$0x1] %v1859_v42  ;;  %v1935_v61 = vshll.u32 %v1904_v32, 16  ;;  %v4283_v1 = vrot.slane %v2307_v51, 9 }
 0x18a   : > { %v2339_v3 = vrot.slane %v1904_v32, 5  ;;  %v1949_v44 = vshll.u32 %v1905_v2, 16  ;;  %v2343_v45 = vrot.slane %v1905_v2, 5  ;;  %v1806_v21 = vor.u32 %v1804_v36, %v1803_v53  ;;  %v5947_v35 = vld [vmem:[#allocation2 + $0x10] sm:$0xf]  ;;  %v5254_v5 = vld [vmem:[%s6419_s2 + $0xc8] sm:$0xff]  }
 0x18b   : > { %v1807_v22 = vrot.slane %v1803_v53, 4  ;;  %v1790_v26 = vor.u32 %v1788_v37, %v1787_v59  ;;  %v1791_v6 = vrot.slane %v1787_v59, 4  ;;  %v5939_v57 = vrot.slane %v1935_v61, 5  ;;  %v5961_v23 = vld [vmem:[#allocation2 + $0x24] sm:$0x1]  ;;  %v5256_v2 = vld [vmem:[%s6419_s2 + $0xd0] sm:$0xff]  }
 0x18c   : > { %v2340_v33 = vsel %vm5910_vm13, %v4283_v1, %v2339_v3  ;;  %v5943_v34 = vrot.slane %v1949_v44, 5  ;;  %v5945_v7 = vrot.slane %v1963_v4, 5  ;;  %v1874_v10 = vsel %vm5878_vm11, %v1806_v21, %v1873_v46  ;;  %v2310_v0 = vld [vmem:[#allocation2 + $0x20] sm:$0xe] }
 0x18d   : > { %v1877_v48 = vsel %vm5885_vm12, %v1807_v22, %v1876_v56  ;;  %v1862_v15 = vsel %vm5878_vm11, %v1790_v26, %v1861_v47  ;;  %v1865_v55 = vsel %vm5885_vm12, %v1791_v6, %v1864_v49  ;;  %1875 = vst [vmem:[#allocation2 + $0x40] sm:$0xf] %v1874_v10  ;;  %v4306_v50 = vcombine.low %v5920_v24, %v2340_v33  ;;  %v5975_v31 = vld [vmem:[#allocation2 + $0x20] sm:$0xf] }
 0x18e   : > { %1878 = vst [vmem:[#allocation2 + $0x44] sm:$0x1] %v1877_v48  ;;  %1863 = vst [vmem:[#allocation2 + $0x30] sm:$0xf] %v1862_v15  ;;  %v4284_v17 = vrot.slane %v2308_v8, 9  ;;  %v4285_v18 = vrot.slane %v2309_v60, 9 }
 0x18f   : > { %1866 = vst [vmem:[#allocation2 + $0x34] sm:$0x1] %v1865_v55  ;;  %v2347_v19 = vrot.slane %v5926_v43, 5  ;;  %v1926_v20 = vshrl.u32 %v5937_v27, 16  ;;  %v1929_v25 = vshll.u32 %v5937_v27, 16  ;;  %v1940_v12 = vshrl.u32 %v5947_v35, 16  ;;  %4846 = vmatprep.mubr.bf16.mxu1 %v4306_v50 }
 0x190   : > { %v1943_v38 = vshll.u32 %v5947_v35, 16  ;;  %v2344_v28 = vsel %vm5910_vm13, %v4284_v17, %v2343_v45  ;;  %v1954_v29 = vshrl.u32 %v5957_v16, 16  ;;  %v1957_v30 = vshll.u32 %v5957_v16, 16  ;;  %v5973_v39 = vld [vmem:[#allocation2 + $0x2c] sm:$0x1] }
 0x191   : > { %v2348_v24 = vsel %vm5910_vm13, %v4285_v18, %v2347_v19  ;;  %v2311_v43 = vld [vmem:[#allocation2 + $0x28] sm:$0xe]  ;;  %v1928_v37 = vrot.slane %v1926_v20, 4  ;;  %v1931_v32 = vrot.slane %v1929_v25, 5  ;;  %v1942_v62 = vrot.slane %v1940_v12, 4  ;;  %v5259_v20 = vld [vmem:[%s6419_s2 + $0xd8] sm:$0xff]  }
 0x192   : > { %v4307_v36 = vcombine.low %v2344_v28, %v2348_v24  ;;  %v5980_v9 = vld [vmem:[#allocation2 + $0x3c] sm:$0x1]  ;;  %v1945_v40 = vrot.slane %v1943_v38, 5  ;;  %v1956_v42 = vrot.slane %v1954_v29, 4  ;;  %v1959_v46 = vrot.slane %v1957_v30, 5 }
 0x193   : > { %v4286_v56 = vrot.slane %v2310_v0, 9  ;;  %v2313_v47 = vld [vmem:[#allocation2 + $0x38] sm:$0xe]  ;;  %v1932_v49 = vor.u32 %v1931_v32, %v1928_v37  ;;  %v2351_v51 = vrot.slane %v5961_v23, 5  ;;  %v4287_v53 = vrot.slane %v2311_v43, 9 }
 0x194   : > { %4847 = vmatmul.mubr.bf16.vlgmr.msra.gmra.mrb[0].mxu1 %v4307_v36  ;;  %v2355_v59 = vrot.slane %v5973_v39, 5  ;;  %v1946_v61 = vor.u32 %v1945_v40, %v1942_v62  ;;  %v1960_v1 = vor.u32 %v1959_v46, %v1956_v42  ;;  %v4289_v3 = vrot.slane %v2313_v47, 9  ;;  %v5996_v10 = vld [vmem:[#allocation2 + $0x28] sm:$0xf]  ;;  %v6028_v38 = vld [vmem:[#allocation2 + $0x38] sm:$0xf] }
 0x195   : > { %4855 = vmatpush3.bf16.msra.mxu1 %v5840_v52  ;;  %v2363_v44 = vrot.slane %v5980_v9, 5  ;;  %v1933_v4 = vrot.slane %v1932_v49, 4  ;;  %v2352_v60 = vsel %vm5910_vm13, %v4286_v56, %v2351_v51  ;;  %v2312_v52 = vld [vmem:[#allocation2 + $0x30] sm:$0xe]  ;;  %v1968_v22 = vshrl.u32 %v5975_v31, 16 }
 0x196   : > { %4856 = vmatprep.subr.bf16.mxu1 %v5254_v5  ;;  %v2356_v45 = vsel %vm5910_vm13, %v4287_v53, %v2355_v59  ;;  %v5993_v21 = vld [vmem:[#allocation2 + $0x34] sm:$0x1]  ;;  %v1947_v26 = vrot.slane %v1946_v61, 4  ;;  %v1961_v6 = vrot.slane %v1960_v1, 4  ;;  %v4288_v33 = vrot.slane %v2312_v52, 9 }
 0x197   : > { %v4308_v8 = vcombine.low %v2352_v60, %v2356_v45  ;;  %v1938_v48 = vsel %vm5528_vm4, %v1933_v4, %v5939_v57  ;;  %v2359_v15 = vrot.slane %v5993_v21, 5  ;;  %v1970_v55 = vrot.slane %v1968_v22, 4  ;;  %v6014_v19 = vld [vmem:[#allocation2 + $0x30] sm:$0xf]  ;;  %v5264_v45 = vld [vmem:[%s6419_s2 + $0xe8] sm:$0xff]  }
 0x198   : > { %v4258_v50 = vcombine.low %v1924_v63, %v1938_v48  ;;  %v1952_v17 = vsel %vm5528_vm4, %v1947_v26, %v5943_v34  ;;  %v1966_v18 = vsel %vm5528_vm4, %v1961_v6, %v5945_v7  ;;  %v1971_v57 = vshll.u32 %v5975_v31, 16  ;;  %v5257_v63 = vld [vmem:[%s6419_s2 + $0x8] sm:$0xff]   ;;  %v2691_v48 = vld [vmem:[#allocation2 + $0x10] sm:$0xf] }
 0x199   : > { %4857 = vmatpush3.bf16.msra.mxu1 %v5254_v5  ;;  %4850 = vmatprep.mubr.bf16.mxu1 %v4308_v8  ;;  %v4259_v0 = vcombine.low %v1952_v17, %v1966_v18  ;;  %v2360_v11 = vsel %vm5910_vm13, %v4288_v33, %v2359_v15  ;;  %v2364_v14 = vsel %vm5910_vm13, %v4289_v3, %v2363_v44  ;;  %v1982_v34 = vshrl.u32 %v5996_v10, 16  ;;  %v5258_v43 = vld [vmem:[#allocation2 + $0x8] ss:$8 sps:$4 sm:$0xff]   ;;  %v5265_v33 = vld [vmem:[%s6419_s2 + $0x20] sm:$0xff]  }
 0x19a   : > { %4858 = vmatprep.subr.bf16.mxu1 %v5256_v2  ;;  %4798 = vmatprep.mubr.bf16.mxu0 %v4258_v50  ;;  %v4309_v7 = vcombine.low %v2360_v11, %v2364_v14  ;;  %v1973_v25 = vrot.slane %v1971_v57, 5  ;;  %v1985_v12 = vshll.u32 %v5996_v10, 16  ;;  %v1977_v28 = vshll.u32 %v5961_v23, 16  ;;  %v5260_v23 = vld [vmem:[%s6419_s2 + $0x10] sm:$0xff]   ;;  %v2689_v50 = vld [vmem:[#allocation2 + $0x8] sm:$0xf] }
 0x19b   : > { %4799 = vmatmul.mubr.bf16.vlgmr.msra.gmra.mrb[8].mxu0 %v4259_v0  ;;  %v1984_v24 = vrot.slane %v1982_v34, 4  ;;  %v1996_v29 = vshrl.u32 %v6014_v19, 16  ;;  %v1999_v30 = vshll.u32 %v6014_v19, 16  ;;  %v1991_v37 = vshll.u32 %v5973_v39, 16  ;;  %v5262_v39 = vld [vmem:[%s6419_s2 + $0xe0] sm:$0xff]   ;;  %v5267_v57 = vld [vmem:[%s6419_s2 + $0x28] sm:$0xff]  }
 0x19c   : > { %4807 = vmatpush3.bf16.msra.mxu0 %v5849_v54  ;;  %4851 = vmatmul.mubr.bf16.gmra.mrb[4].mxu1 %v4309_v7  ;;  %v1974_v36 = vor.u32 %v1973_v25, %v1970_v55  ;;  %v1987_v5 = vrot.slane %v1985_v12, 5  ;;  %v2005_v32 = vshll.u32 %v5993_v21, 16  ;;  %v2010_v42 = vshrl.u32 %v6028_v38, 16  ;;  %v5266_v55 = vld [vmem:[%s6419_s2 + $0xf0] sm:$0xff]   ;;  %v5271_v34 = vld [vmem:[%s6419_s2 + $0x100] sm:$0xff]  }
 0x19d   : > { %4859 = vmatpush3.bf16.msra.mxu1 %v5256_v2  ;;  %4808 = vmatprep.subr.bf16.mxu0 %v5257_v63  ;;  %v1998_v62 = vrot.slane %v1996_v29, 4  ;;  %v2001_v40 = vrot.slane %v1999_v30, 5  ;;  %v2013_v54 = vshll.u32 %v6028_v38, 16  ;;  %v2019_v53 = vshll.u32 %v5980_v9, 16  ;;  %v5263_v9 = vld [vmem:[%s6419_s2 + $0x18] sm:$0xff]   ;;  %v5274_v30 = vld [vmem:[%s6419_s2 + $0x108] sm:$0xff]  }
 0x19e   : > { %4870 = vmatprep.mubr.bf16.mxu1 %v5258_v43  ;;  %4860 = vmatprep.subr.bf16.mxu1 %v5259_v20  ;;  %v1975_v46 = vrot.slane %v1974_v36, 4  ;;  %v1988_v56 = vor.u32 %v1987_v5, %v1984_v24  ;;  %v2012_v49 = vrot.slane %v2010_v42, 4  ;;  %v1979_v59 = vrot.slane %v1977_v28, 5  ;;  %v6079_v25 = vld [vmem:[#allocation2 + $0x14] sm:$0x1]  ;;  %v5273_v28 = vld [vmem:[%s6419_s2 + $0x38] sm:$0xff]  }
 0x19f   : > { %v2002_v47 = vor.u32 %v2001_v40, %v1998_v62  ;;  %v2015_v51 = vrot.slane %v2013_v54, 5  ;;  %v1993_v1 = vrot.slane %v1991_v37, 5  ;;  %v2007_v3 = vrot.slane %v2005_v32, 5  ;;  %v6084_v24 = vld [vmem:[#allocation2 + $0xc] sm:$0x1] }
 0x1a0   : > { %4809 = vmatpush3.bf16.msra.mxu0 %v5257_v63  ;;  %v1989_v61 = vrot.slane %v1988_v56, 4  ;;  %v1980_v4 = vsel %vm5528_vm4, %v1975_v46, %v1979_v59  ;;  %v2021_v26 = vrot.slane %v2019_v53, 5  ;;  %v4270_v15 = vcombine.low %v5852_v58, %v5937_v27  ;;  %v5268_v58 = vld [vmem:[%s6419_s2 + $0xf8] sm:$0xff]   ;;  %v5269_v63 = vld [vmem:[%s6419_s2 + $0x30] sm:$0xff]   ;;  %v2695_v53 = vld [vmem:[#allocation2 + $0x20] sm:$0xf] }
 0x1a1   : > { %4861 = vmatpush3.bf16.msra.mxu1 %v5259_v20  ;;  %4810 = vmatprep.subr.bf16.mxu0 %v5260_v23  ;;  %v2003_v2 = vrot.slane %v2002_v47, 4  ;;  %v2016_v44 = vor.u32 %v2015_v51, %v2012_v49  ;;  %v2720_v17 = vshrl.u32 %v2691_v48, 16  ;;  %v2723_v18 = vshll.u32 %v2691_v48, 16  ;;  %v5270_v29 = vld [vmem:[#allocation2 + $0x18] ss:$8 sps:$4 sm:$0xff]  }
 0x1a2   : > { %v1994_v60 = vsel %vm5528_vm4, %v1989_v61, %v1993_v1  ;;  %4862 = vmatprep.subr.bf16.mxu1 %v5262_v39  ;;  %v2706_v27 = vshrl.u32 %v2689_v50, 16  ;;  %v2709_v0 = vshll.u32 %v2689_v50, 16  ;;  %v2729_v36 = vshll.u32 %v6079_v25, 16  ;;  %v5272_v5 = vld [vmem:[#allocation2 + $0x28] ss:$8 sps:$4 sm:$0xff]   ;;  %v5279_v49 = vld [vmem:[%s6419_s2 + $0x118] sm:$0xff]  }
 0x1a3   : > { %v4260_v21 = vcombine.low %v1980_v4, %v1994_v60  ;;  %v2008_v52 = vsel %vm5528_vm4, %v2003_v2, %v2007_v3  ;;  %v2017_v22 = vrot.slane %v2016_v44, 4  ;;  %v2722_v11 = vrot.slane %v2720_v17, 4  ;;  %v2697_v61 = vld [vmem:[#allocation2 + $0x28] sm:$0xf]  ;;  %v6119_v48 = vld [vmem:[#allocation2 + $0x24] sm:$0x1] }
 0x1a4   : > { %4811 = vmatpush3.bf16.msra.mxu0 %v5260_v23  ;;  %v2725_v14 = vrot.slane %v2723_v18, 5  ;;  %v2708_v7 = vrot.slane %v2706_v27, 4  ;;  %v2711_v20 = vrot.slane %v2709_v0, 5  ;;  %v2715_v37 = vshll.u32 %v6084_v24, 16  ;;  %v5278_v23 = vld [vmem:[%s6419_s2 + $0x110] sm:$0xff]   ;;  %v5282_v60 = vld [vmem:[%s6419_s2 + $0x128] sm:$0xff]  }
 0x1a5   : > { %4802 = vmatprep.mubr.bf16.mxu0 %v4260_v21  ;;  %v2022_v6 = vsel %vm5528_vm4, %v2017_v22, %v2021_v26  ;;  %4863 = vmatpush3.bf16.msra.mxu1 %v5262_v39  ;;  %v2731_v40 = vrot.slane %v2729_v36, 5  ;;  %v4271_v46 = vcombine.low %v5947_v35, %v5957_v16  ;;  %v4272_v56 = vcombine.low %v5975_v31, %v5996_v10  ;;  %v5277_v39 = vld [vmem:[#allocation2 + $0x38] ss:$8 sps:$4 sm:$0xff]   ;;  %v2699_v35 = vld [vmem:[#allocation2 + $0x30] sm:$0xf] }
 0x1a6   : > { %v4261_v8 = vcombine.low %v2008_v52, %v2022_v6  ;;  %4812 = vmatprep.subr.bf16.mxu0 %v5263_v9  ;;  %4864 = vmatprep.subr.bf16.mxu1 %v5264_v45  ;;  %v2726_v12 = vor.u32 %v2725_v14, %v2722_v11  ;;  %v2712_v43 = vor.u32 %v2711_v20, %v2708_v7  ;;  %v2717_v42 = vrot.slane %v2715_v37, 5  ;;  %v5281_v16 = vld [vmem:[%s6419_s2 + $0x120] sm:$0xff]   ;;  %v2693_v31 = vld [vmem:[#allocation2 + $0x18] sm:$0xf]  ;;  %v6122_v18 = vld [vmem:[#allocation2 + $0x34] sm:$0x1] }
 0x1a7   : > { %v2748_v10 = vshrl.u32 %v2695_v53, 16  ;;  %v2751_v59 = vshll.u32 %v2695_v53, 16  ;;  %v2776_v1 = vshrl.u32 %v2699_v35, 16  ;;  %v2779_v2 = vshll.u32 %v2699_v35, 16  ;;  %v2703_v6 = vld [vmem:[#allocation2 + $0x40] sm:$0xf] }
 0x1a8   : > { %4803 = vmatmul.mubr.bf16.gmra.mrb[12].mxu0 %v4261_v8  ;;  %v2727_v32 = vrot.slane %v2726_v12, 4  ;;  %v2713_v62 = vrot.slane %v2712_v43, 4  ;;  %v4273_v3 = vcombine.low %v6014_v19, %v6028_v38  ;;  %v2734_v44 = vshrl.u32 %v2693_v31, 16  ;;  %v5283_v19 = vld [vmem:[%s6419_s2 + $0x130] sm:$0xff]   ;;  %v2701_v50 = vld [vmem:[#allocation2 + $0x38] sm:$0xf] }
 0x1a9   : > { %4822 = vmatprep.mubr.bf16.mxu0 %v4270_v15  ;;  %4813 = vmatpush3.bf16.msra.mxu0 %v5263_v9  ;;  %v2737_v4 = vshll.u32 %v2693_v31, 16  ;;  %v2762_v9 = vshrl.u32 %v2697_v61, 16  ;;  %v2750_v21 = vrot.slane %v2748_v10, 4  ;;  %v2753_v52 = vrot.slane %v2751_v59, 5  ;;  %v6124_v27 = vld [vmem:[#allocation2 + $0x1c] sm:$0x1] }
 0x1aa   : > { %4865 = vmatpush3.bf16.msra.mxu1 %v5264_v45  ;;  %4814 = vmatprep.subr.bf16.mxu0 %v5265_v33  ;;  %v2732_v54 = vsel %vm5528_vm4, %v2727_v32, %v2731_v40  ;;  %v2718_v47 = vsel %vm5528_vm4, %v2713_v62, %v2717_v42  ;;  %v2765_v45 = vshll.u32 %v2697_v61, 16  ;;  %v2778_v22 = vrot.slane %v2776_v1, 4  ;;  %v5284_v20 = vld [vmem:[%s6419_s2 + $0x138] sm:$0xff]   ;;  %v2972_v61 = vld [vmem:[#allocation2 + $0x10] sm:$0xe] }
 0x1ab   : > { %4866 = vmatprep.subr.bf16.mxu1 %v5266_v55  ;;  %v4362_v51 = vcombine.low %v2718_v47, %v2732_v54  ;;  %v2781_v26 = vrot.slane %v2779_v2, 5  ;;  %v2736_v38 = vrot.slane %v2734_v44, 4  ;;  %v2739_v8 = vrot.slane %v2737_v4, 5  ;;  %v5285_v54 = vld [vmem:[%s6419_s2 + $0x140] sm:$0xff]  }
 0x1ac   : > { %v2764_v15 = vrot.slane %v2762_v9, 4  ;;  %v2754_v17 = vor.u32 %v2753_v52, %v2750_v21  ;;  %v2757_v14 = vshll.u32 %v6119_v48, 16  ;;  %v2793_v7 = vshll.u32 %v2701_v50, 16  ;;  %v2971_v9 = vld [vmem:[#allocation2 + $0x8] sm:$0xe] }
 0x1ad   : > { %4815 = vmatpush3.bf16.msra.mxu0 %v5265_v33  ;;  %v3852_v33 = vld [vmem:[%s6420_s3] sm:$0x3]  ;;  %v2782_v0 = vor.u32 %v2781_v26, %v2778_v22  ;;  %v2740_v11 = vor.u32 %v2739_v8, %v2736_v38  ;;  %v3001_v21 = vrot.slane %v6079_v25, 5  ;;  %v4374_v38 = vrot.slane %v2971_v9, 9 }
 0x1ae   : > { %4867 = vmatpush3.bf16.msra.mxu1 %v5266_v55  ;;  %4816 = vmatprep.subr.bf16.mxu0 %v5267_v57  ;;  %v2767_v55 = vrot.slane %v2765_v45, 5  ;;  %v3893_v32 = vsel %vm331_vm0, %v3852_v33, 0  ;;  %v2759_v62 = vrot.slane %v2757_v14, 5  ;;  %v2795_v42 = vrot.slane %v2793_v7, 5  ;;  %v5321_v52 = vld [vmem:[%s5495_s21 + $0xd8] ss:$8 sps:$4 sm:$0xff]  }
 0x1af   : > { %4868 = vmatprep.subr.bf16.mxu1 %v5268_v58  ;;  %v2783_v37 = vrot.slane %v2782_v0, 4  ;;  %v4375_v45 = vrot.slane %v2972_v61, 9  ;;  %v2997_v8 = vrot.slane %v6084_v24, 5  ;;  %v5324_v0 = vld [vmem:[%s5495_s21 + $0x108] ss:$8 sps:$4 sm:$0xff]  }
 0x1b0   : > { %v2768_v12 = vor.u32 %v2767_v55, %v2764_v15  ;;  %v5290_v14 = vld [vmem:[%s6419_s2 + $0x168] sm:$0xff]   ;;  %v2974_v7 = vld [vmem:[#allocation2 + $0x20] sm:$0xe] }
 0x1b1   : > { %4817 = vmatpush3.bf16.msra.mxu0 %v5267_v57  ;;  %v2804_v57 = vshrl.u32 %v2703_v6, 16  ;;  %v3002_v15 = vsel %vm5910_vm13, %v4375_v45, %v3001_v21  ;;  %v2998_v24 = vsel %vm5910_vm13, %v4374_v38, %v2997_v8  ;;  %v5301_v45 = vld [vmem:[%s6419_s2 + $0x1b8] sm:$0xff]   ;;  %v6237_v8 = vld [vmem:[#allocation2 + $0x14] sm:$0x1] }
 0x1b2   : > { %4869 = vmatpush3.bf16.msra.mxu1 %v5268_v58  ;;  %4818 = vmatprep.subr.bf16.mxu0 %v5269_v63  ;;  %v2807_v58 = vshll.u32 %v2703_v6, 16  ;;  %v5322_v6 = vld [vmem:[%s5495_s21 + $0xe8] ss:$8 sps:$4 sm:$0xff]  }
 0x1b3   : > { %4878 = vmatprep.subr.bf16.mxu1 %v5271_v34  ;;  %v2806_v43 = vrot.slane %v2804_v57, 4  ;;  %v4398_v57 = vcombine.low %v2998_v24, %v3002_v15  ;;  %v5302_v15 = vld [vmem:[#allocation2 + $0x20] ss:$8 sps:$4 sm:$0xff]  }
 0x1b4   : > { %v2809_v36 = vrot.slane %v2807_v58, 5  ;;  %v5323_v58 = vld [vmem:[%s5495_s21 + $0xf8] ss:$8 sps:$4 sm:$0xff]  }
 0x1b5   : > { %4819 = vmatpush3.bf16.msra.mxu0 %v5269_v63  ;;  %4871 = vmatmul.mubr.bf16.vlgmr.msra.gmra.mrb[0].mxu1 %v5270_v29  ;;  %v6127_v63 = vld [vmem:[#allocation2 + $0x2c] sm:$0x1]  ;;  %v2743_v29 = vshll.u32 %v6124_v27, 16 }
 0x1b6   : > { %4874 = vmatprep.mubr.bf16.mxu1 %v5272_v5  ;;  %4879 = vmatpush3.bf16.msra.mxu1 %v5271_v34  ;;  %v2790_v34 = vshrl.u32 %v2701_v50, 16  ;;  %v2771_v5 = vshll.u32 %v6127_v63, 16 }
 0x1b7   : > { %4820 = vmatprep.subr.bf16.mxu0 %v5273_v28  ;;  %4880 = vmatprep.subr.bf16.mxu1 %v5274_v30  ;;  %v2745_v47 = vrot.slane %v2743_v29, 5  ;;  %v4377_v29 = vrot.slane %v2974_v7, 9 }
 0x1b8   : > { %v2792_v40 = vrot.slane %v2790_v34, 4  ;;  %v2773_v53 = vrot.slane %v2771_v5, 5  ;;  %v5291_v34 = vld [vmem:[%s6419_s2 + $0x170] sm:$0xff]   ;;  %v3017_v5 = vrot.slane %v6122_v18, 5 }
 0x1b9   : > { %4821 = vmatpush3.bf16.msra.mxu0 %v5273_v28  ;;  %v2785_v28 = vshll.u32 %v6122_v18, 16 }
 0x1ba   : > { %4881 = vmatpush3.bf16.msra.mxu1 %v5274_v30  ;;  %5169 = vmatprep.subr.msk.bf16.mxu0 %vm331_vm0, %v3852_v33  ;;  %v2755_v30 = vrot.slane %v2754_v17, 4  ;;  %v2796_v10 = vor.u32 %v2795_v42, %v2792_v40  ;;  %v5288_v17 = vld [vmem:[%s6419_s2 + $0x158] sm:$0xff]   ;;  %v3013_v40 = vrot.slane %v6127_v63, 5  ;;  %v5294_v63 = vld [vmem:[%s6419_s2 + $0x188] sm:$0xff]  }
 0x1bb   : > { %4882 = vmatprep.subr.bf16.mxu1 %v5278_v23 }
 0x1bc   : > { %4823 = vmatmul.mubr.bf16.vlgmr.msra.gmra.mrb[8].mxu0 %v4271_v46  ;;  %v2769_v46 = vrot.slane %v2768_v12, 4  ;;  %v2797_v22 = vrot.slane %v2796_v10, 4  ;;  %v5292_v12 = vld [vmem:[%s6419_s2 + $0x178] sm:$0xff]  }
 0x1bd   : > { %4826 = vmatprep.mubr.bf16.mxu0 %v4272_v56  ;;  %4875 = vmatmul.mubr.bf16.gmra.mrb[4].mxu1 %v5277_v39  ;;  %v2787_v56 = vrot.slane %v2785_v28, 5  ;;  %v6139_v39 = vld [vmem:[#allocation2 + $0x44] sm:$0x1]  ;;  %v2973_v28 = vld [vmem:[#allocation2 + $0x18] sm:$0xe] }
 0x1be   : > { %4883 = vmatpush3.bf16.msra.mxu1 %v5278_v23  ;;  %4894 = vmatprep.mubr.bf16.mxu1 %v4362_v51  ;;  %v2741_v23 = vrot.slane %v2740_v11, 4  ;;  %v2810_v51 = vor.u32 %v2809_v36, %v2806_v43  ;;  %v2813_v59 = vshll.u32 %v6139_v39, 16  ;;  %v2774_v2 = vsel %vm5528_vm4, %v2769_v46, %v2773_v53  ;;  %v5289_v11 = vld [vmem:[%s6419_s2 + $0x160] sm:$0xff]   ;;  %v2975_v43 = vld [vmem:[#allocation2 + $0x28] sm:$0xe] }
 0x1bf   : > { %4884 = vmatprep.subr.bf16.mxu1 %v5279_v49  ;;  %4999 = vmatpush3.bf16.msra.mxu0 %v3893_v32  ;;  %v2788_v35 = vsel %vm5528_vm4, %v2783_v37, %v2787_v56  ;;  %v4376_v37 = vrot.slane %v2973_v28, 9  ;;  %v3005_v32 = vrot.slane %v6124_v27, 5  ;;  %v2977_v56 = vld [vmem:[#allocation2 + $0x38] sm:$0xe] }
 0x1c0   : > { %v2746_v31 = vsel %vm5528_vm4, %v2741_v23, %v2745_v47  ;;  %v4364_v44 = vcombine.low %v2774_v2, %v2788_v35  ;;  %v2815_v26 = vrot.slane %v2813_v59, 5  ;;  %v5293_v23 = vld [vmem:[%s6419_s2 + $0x180] sm:$0xff]   ;;  %v4380_v53 = vrot.slane %v2977_v56, 9  ;;  %v5299_v2 = vld [vmem:[%s6419_s2 + $0x1a8] sm:$0xff]   ;;  %v5308_v28 = vld [vmem:[%s6419_s2 + $0x1d8] sm:$0xff]  }
 0x1c1   : > { %v3006_v18 = vsel %vm5910_vm13, %v4376_v37, %v3005_v32 }
 0x1c2   : > { %4885 = vmatpush3.bf16.msra.mxu1 %v5279_v49  ;;  %v2760_v49 = vsel %vm5528_vm4, %v2755_v30, %v2759_v62  ;;  %v3009_v30 = vrot.slane %v6119_v48, 5  ;;  %v4378_v62 = vrot.slane %v2975_v43, 9  ;;  %v3360_v43 = vld [vmem:[#allocation2 + $0x30] sm:$0xf] }
 0x1c3   : > { %4886 = vmatprep.subr.bf16.mxu1 %v5281_v16  ;;  %v4363_v1 = vcombine.low %v2746_v31, %v2760_v49  ;;  %v5295_v31 = vld [vmem:[%s6419_s2 + $0x190] sm:$0xff]  }
 0x1c4   : > { %4827 = vmatmul.mubr.bf16.gmra.mrb[12].mxu0 %v4273_v3  ;;  %v5286_v3 = vld [vmem:[%s6419_s2 + $0x148] sm:$0xff]   ;;  %v3010_v42 = vsel %vm5910_vm13, %v4377_v29, %v3009_v30  ;;  %v3014_v46 = vsel %vm5910_vm13, %v4378_v62, %v3013_v40  ;;  %v3425_v62 = vshrl.u32 %v3360_v43, 16  ;;  %v3428_v40 = vshll.u32 %v3360_v43, 16 }
 0x1c5   : > { %5000 = vmatprep.mubr.msk.bf16.mxu0 %vm318_vm1, %v5321_v52  ;;  %v4399_v27 = vcombine.low %v3006_v18, %v3010_v42  ;;  %v3358_v30 = vld [vmem:[#allocation2 + $0x28] sm:$0xf] }
 0x1c6   : > { %4887 = vmatpush3.bf16.msra.mxu1 %v5281_v16  ;;  %v6145_v16 = vld [vmem:[#allocation2 + $0x3c] sm:$0x1]  ;;  %v3411_v37 = vshrl.u32 %v3358_v30, 16  ;;  %v3414_v32 = vshll.u32 %v3358_v30, 16 }
 0x1c7   : > { %4888 = vmatprep.subr.bf16.mxu1 %v5282_v60  ;;  %v2799_v4 = vshll.u32 %v6145_v16, 16  ;;  %v3021_v35 = vrot.slane %v6145_v16, 5  ;;  %v5298_v16 = vld [vmem:[%s6419_s2 + $0x1a0] sm:$0xff]  }
 0x1c8   : > { %v3416_v56 = vrot.slane %v3414_v32, 5 }
 0x1c9   : > { %v2801_v33 = vrot.slane %v2799_v4, 5  ;;  %v3022_v59 = vsel %vm5910_vm13, %v4380_v53, %v3021_v35  ;;  %v3354_v4 = vld [vmem:[#allocation2 + $0x18] sm:$0xf] }
 0x1ca   : > { %4889 = vmatpush3.bf16.msra.mxu1 %v5282_v60  ;;  %v2811_v60 = vrot.slane %v2810_v51, 4  ;;  %v3025_v51 = vrot.slane %v6139_v39, 5  ;;  %v5297_v39 = vld [vmem:[%s6419_s2 + $0x198] sm:$0xff]   ;;  %v3383_v21 = vshrl.u32 %v3354_v4, 16  ;;  %v3386_v52 = vshll.u32 %v3354_v4, 16 }
 0x1cb   : > { %4890 = vmatprep.subr.bf16.mxu1 %v5283_v19  ;;  %v2802_v55 = vsel %vm5528_vm4, %v2797_v22, %v2801_v33  ;;  %v6269_v4 = vld [vmem:[#allocation2 + $0x24] sm:$0x1] }
 0x1cc   : > { %v2816_v25 = vsel %vm5528_vm4, %v2811_v60, %v2815_v26  ;;  %5001 = vmatmul.mubr.msk.bf16.vlgmr.msra.gmra.mrb[16].mxu0 %vm318_vm1, %v5322_v6  ;;  %v5303_v6 = vld [vmem:[%s6419_s2 + $0x1c0] sm:$0xff]   ;;  %v3388_v38 = vrot.slane %v3386_v52, 5  ;;  %v5312_v52 = vld [vmem:[%s6419_s2 + $0x1f8] sm:$0xff]  }
 0x1cd   : > { %v4365_v50 = vcombine.low %v2802_v55, %v2816_v25  ;;  %5004 = vmatprep.mubr.msk.bf16.mxu0 %vm318_vm1, %v5323_v58  ;;  %v6239_v25 = vld [vmem:[#allocation2 + $0x1c] sm:$0x1]  ;;  %v5305_v55 = vld [vmem:[%s6419_s2 + $0x1c8] sm:$0xff]  }
 0x1ce   : > { %4891 = vmatpush3.bf16.msra.mxu1 %v5283_v19  ;;  %v5287_v19 = vld [vmem:[%s6419_s2 + $0x150] sm:$0xff]   ;;  %v3392_v58 = vshll.u32 %v6239_v25, 16 }
 0x1cf   : > { %4892 = vmatprep.subr.bf16.mxu1 %v5284_v20 }
 0x1d0   : > { %v3394_v7 = vrot.slane %v3392_v58, 5  ;;  %v6280_v58 = vld [vmem:[#allocation2 + $0x4c] sm:$0x1] }
 0x1d2   : > { %4893 = vmatpush3.bf16.msra.mxu1 %v5284_v20  ;;  %v2976_v20 = vld [vmem:[#allocation2 + $0x30] sm:$0xe] }
 0x1d3   : > { %4902 = vmatprep.subr.bf16.mxu1 %v5285_v54  ;;  %v4379_v36 = vrot.slane %v2976_v20, 9  ;;  %v5306_v20 = vld [vmem:[#allocation2 + $0x40] ss:$8 sps:$4 sm:$0xff]  }
 0x1d4   : > { %5005 = vmatmul.mubr.msk.bf16.gmra.mrb[20].mxu0 %vm318_vm1, %v5324_v0  ;;  %v5307_v0 = vld [vmem:[%s6419_s2 + $0x1d0] sm:$0xff]  }
 0x1d5   : > { %4895 = vmatmul.mubr.bf16.vlgmr.msra.gmra.mrb[0].mxu1 %v4363_v1  ;;  %v3018_v48 = vsel %vm5910_vm13, %v4379_v36, %v3017_v5  ;;  %v5296_v1 = vld [vmem:[#allocation2 + $0x10] ss:$8 sps:$4 sm:$0xff]   ;;  %v5309_v36 = vld [vmem:[%s6419_s2 + $0x1e0] sm:$0xff]  }
 0x1d6   : > { %4898 = vmatprep.mubr.bf16.mxu1 %v4364_v44  ;;  %4903 = vmatpush3.bf16.msra.mxu1 %v5285_v54  ;;  %v2978_v54 = vld [vmem:[#allocation2 + $0x40] sm:$0xe]  ;;  %v4400_v47 = vcombine.low %v3014_v46, %v3018_v48  ;;  %v5300_v44 = vld [vmem:[%s6419_s2 + $0x1b0] sm:$0xff]   ;;  %v3366_v46 = vld [vmem:[#allocation2 + $0x48] sm:$0xf] }
 0x1d7   : > { %4904 = vmatprep.subr.bf16.mxu1 %v5286_v3  ;;  %v4381_v49 = vrot.slane %v2978_v54, 9  ;;  %v3356_v5 = vld [vmem:[#allocation2 + $0x20] sm:$0xf]  ;;  %v5310_v54 = vld [vmem:[%s6419_s2 + $0x1e8] sm:$0xff]  }
 0x1d8   : > { %v3397_v42 = vshrl.u32 %v3356_v5, 16  ;;  %v3400_v48 = vshll.u32 %v3356_v5, 16 }
 0x1d9   : > { %v3026_v10 = vsel %vm5910_vm13, %v4381_v49, %v3025_v51  ;;  %v3430_v49 = vrot.slane %v3428_v40, 5  ;;  %v3364_v51 = vld [vmem:[#allocation2 + $0x40] sm:$0xf] }
 0x1da   : > { %4905 = vmatpush3.bf16.msra.mxu1 %v5286_v3  ;;  %v4401_v61 = vcombine.low %v3022_v59, %v3026_v10  ;;  %v3352_v3 = vld [vmem:[#allocation2 + $0x10] sm:$0xf]  ;;  %v3399_v53 = vrot.slane %v3397_v42, 4  ;;  %v3402_v35 = vrot.slane %v3400_v48, 5  ;;  %v6265_v59 = vld [vmem:[#allocation2 + $0x2c] sm:$0x1] }
 0x1db   : > { %4906 = vmatprep.subr.bf16.mxu1 %v5287_v19  ;;  %v3369_v60 = vshrl.u32 %v3352_v3, 16  ;;  %v3372_v9 = vshll.u32 %v3352_v3, 16  ;;  %v5311_v10 = vld [vmem:[%s6419_s2 + $0x1f0] sm:$0xff]   ;;  %v3453_v3 = vshrl.u32 %v3364_v51, 16 }
 0x1dd   : > { %4899 = vmatmul.mubr.bf16.gmra.mrb[4].mxu1 %v4365_v50  ;;  %v3371_v22 = vrot.slane %v3369_v60, 4  ;;  %v3374_v26 = vrot.slane %v3372_v9, 5  ;;  %v3378_v50 = vshll.u32 %v6237_v8, 16  ;;  %v3403_v9 = vor.u32 %v3402_v35, %v3399_v53 }
 0x1de   : > { %4907 = vmatpush3.bf16.msra.mxu1 %v5287_v19  ;;  %4918 = vmatprep.mubr.bf16.mxu1 %v4398_v57  ;;  %v3385_v19 = vrot.slane %v3383_v21, 4  ;;  %v6272_v21 = vld [vmem:[#allocation2 + $0x3c] sm:$0x1] }
 0x1df   : > { %4908 = vmatprep.subr.bf16.mxu1 %v5288_v17  ;;  %v3375_v33 = vor.u32 %v3374_v26, %v3371_v22 }
 0x1e0   : > { %v3389_v24 = vor.u32 %v3388_v38, %v3385_v19  ;;  %v3406_v38 = vshll.u32 %v6269_v4, 16 }
 0x1e1   : > { %v3376_v57 = vrot.slane %v3375_v33, 4 }
 0x1e2   : > { %4909 = vmatpush3.bf16.msra.mxu1 %v5288_v17  ;;  %v5304_v17 = vld [vmem:[#allocation2 + $0x30] ss:$8 sps:$4 sm:$0xff]  }
 0x1e3   : > { %4910 = vmatprep.subr.bf16.mxu1 %v5289_v11 }
 0x1e6   : > { %4911 = vmatpush3.bf16.msra.mxu1 %v5289_v11  ;;  %v3380_v11 = vrot.slane %v3378_v50, 5 }
 0x1e7   : > { %4912 = vmatprep.subr.bf16.mxu1 %v5290_v14 }
 0x1ea   : > { %4913 = vmatpush3.bf16.msra.mxu1 %v5290_v14  ;;  %v3390_v14 = vrot.slane %v3389_v24, 4  ;;  %v3448_v24 = vshll.u32 %v6272_v21, 16 }
 0x1eb   : > { %4914 = vmatprep.subr.bf16.mxu1 %v5291_v34 }
 0x1ec   : > { %v3450_v43 = vrot.slane %v3448_v24, 5 }
 0x1ee   : > { %4915 = vmatpush3.bf16.msra.mxu1 %v5291_v34  ;;  %v3381_v34 = vsel %vm5528_vm4, %v3376_v57, %v3380_v11 }
 0x1ef   : > { %4916 = vmatprep.subr.bf16.mxu1 %v5292_v12 }
 0x1f2   : > { %4917 = vmatpush3.bf16.msra.mxu1 %v5292_v12  ;;  %v3395_v12 = vsel %vm5528_vm4, %v3390_v14, %v3394_v7 }
 0x1f3   : > { %4926 = vmatprep.subr.bf16.mxu1 %v5293_v23  ;;  %v4454_v29 = vcombine.low %v3381_v34, %v3395_v12  ;;  %v6285_v34 = vld [vmem:[#allocation2 + $0x44] sm:$0x1] }
 0x1f4   : > { %v3462_v5 = vshll.u32 %v6285_v34, 16 }
 0x1f5   : > { %4919 = vmatmul.mubr.bf16.vlgmr.msra.gmra.mrb[0].mxu1 %v4399_v27 }
 0x1f6   : > { %4922 = vmatprep.mubr.bf16.mxu1 %v4400_v47  ;;  %4927 = vmatpush3.bf16.msra.mxu1 %v5293_v23  ;;  %v3362_v23 = vld [vmem:[#allocation2 + $0x38] sm:$0xf]  ;;  %v3427_v47 = vrot.slane %v3425_v62, 4  ;;  %v5314_v62 = vld [vmem:[%s6419_s2 + $0x208] sm:$0xff]  }
 0x1f7   : > { %4928 = vmatprep.subr.bf16.mxu1 %v5294_v63  ;;  %v3439_v18 = vshrl.u32 %v3362_v23, 16  ;;  %v3442_v27 = vshll.u32 %v3362_v23, 16 }
 0x1f8   : > { %v3431_v60 = vor.u32 %v3430_v49, %v3427_v47  ;;  %v3664_v49 = vrot.slane %v6239_v25, 5 }
 0x1fa   : > { %4929 = vmatpush3.bf16.msra.mxu1 %v5294_v63  ;;  %v3413_v63 = vrot.slane %v3411_v37, 4  ;;  %v3432_v50 = vrot.slane %v3431_v60, 4  ;;  %v3634_v37 = vld [vmem:[#allocation2 + $0x10] sm:$0xe] }
 0x1fb   : > { %4930 = vmatprep.subr.bf16.mxu1 %v5295_v31 }
 0x1fd   : > { %4923 = vmatmul.mubr.bf16.gmra.mrb[4].mxu1 %v4401_v61  ;;  %v3441_v61 = vrot.slane %v3439_v18, 4  ;;  %v3635_v18 = vld [vmem:[#allocation2 + $0x18] sm:$0xe] }
 0x1fe   : > { %4931 = vmatpush3.bf16.msra.mxu1 %v5295_v31  ;;  %4942 = vmatprep.mubr.bf16.mxu1 %v5296_v1  ;;  %v3467_v31 = vshrl.u32 %v3366_v46, 16  ;;  %v3470_v1 = vshll.u32 %v3366_v46, 16  ;;  %v3660_v46 = vrot.slane %v6237_v8, 5  ;;  %v4467_v47 = vrot.slane %v3635_v18, 9 }
 0x1ff   : > { %4932 = vmatprep.subr.bf16.mxu1 %v5297_v39 }
 0x200   : > { %v3472_v19 = vrot.slane %v3470_v1, 5  ;;  %v3637_v1 = vld [vmem:[#allocation2 + $0x28] sm:$0xe] }
 0x201   : > { %v4469_v60 = vrot.slane %v3637_v1, 9 }
 0x202   : > { %4933 = vmatpush3.bf16.msra.mxu1 %v5297_v39  ;;  %v3444_v39 = vrot.slane %v3442_v27, 5  ;;  %v4466_v27 = vrot.slane %v3634_v37, 9 }
 0x203   : > { %4934 = vmatprep.subr.bf16.mxu1 %v5298_v16 }
 0x204   : > { %v3445_v26 = vor.u32 %v3444_v39, %v3441_v61  ;;  %v3661_v8 = vsel %vm5910_vm13, %v4466_v27, %v3660_v46  ;;  %v5318_v61 = vld [vmem:[%s6419_s2 + $0x228] sm:$0xff]   ;;  %v5319_v39 = vld [vmem:[%s6419_s2 + $0x230] sm:$0xff]   ;;  %v4510_v27 = vld [vmem:[%s6423_s6] ss:$0 sm:$0xff] }
 0x206   : > { %4935 = vmatpush3.bf16.msra.mxu1 %v5298_v16  ;;  %v3417_v16 = vor.u32 %v3416_v56, %v3413_v63  ;;  %v3446_v14 = vrot.slane %v3445_v26, 4  ;;  %v3464_v63 = vrot.slane %v3462_v5, 5  ;;  %v5315_v56 = vld [vmem:[%s6419_s2 + $0x210] sm:$0xff]  }
 0x207   : > { %4936 = vmatprep.subr.bf16.mxu1 %v5299_v2 }
 0x208   : > { %v3418_v33 = vrot.slane %v3417_v16, 4  ;;  %v3451_v23 = vsel %vm5528_vm4, %v3446_v14, %v3450_v43  ;;  %v3638_v16 = vld [vmem:[#allocation2 + $0x30] sm:$0xe] }
 0x20a   : > { %4937 = vmatpush3.bf16.msra.mxu1 %v5299_v2  ;;  %v6267_v2 = vld [vmem:[#allocation2 + $0x34] sm:$0x1] }
 0x20b   : > { %4938 = vmatprep.subr.bf16.mxu1 %v5300_v44  ;;  %v3434_v22 = vshll.u32 %v6267_v2, 16 }
 0x20d   : > { %v3436_v11 = vrot.slane %v3434_v22, 5  ;;  %v3676_v22 = vrot.slane %v6267_v2, 5 }
 0x20e   : > { %4939 = vmatpush3.bf16.msra.mxu1 %v5300_v44  ;;  %v3456_v44 = vshll.u32 %v3364_v51, 16 }
 0x20f   : > { %4940 = vmatprep.subr.bf16.mxu1 %v5301_v45  ;;  %v3437_v30 = vsel %vm5528_vm4, %v3432_v50, %v3436_v11 }
 0x210   : > { %v4456_v40 = vcombine.low %v3437_v30, %v3451_v23 }
 0x212   : > { %4941 = vmatpush3.bf16.msra.mxu1 %v5301_v45  ;;  %v3420_v45 = vshll.u32 %v6265_v59, 16 }
 0x213   : > { %4950 = vmatprep.subr.bf16.mxu1 %v5303_v6 }
 0x214   : > { %v3422_v57 = vrot.slane %v3420_v45, 5  ;;  %v3639_v45 = vld [vmem:[#allocation2 + $0x38] sm:$0xe] }
 0x215   : > { %4943 = vmatmul.mubr.bf16.vlgmr.msra.gmra.mrb[0].mxu1 %v5302_v15  ;;  %v3455_v15 = vrot.slane %v3453_v3, 4  ;;  %v5320_v3 = vld [vmem:[%s6419_s2 + $0x238] sm:$0xff]  }
 0x216   : > { %4946 = vmatprep.mubr.bf16.mxu1 %v5304_v17  ;;  %4951 = vmatpush3.bf16.msra.mxu1 %v5303_v6  ;;  %v3469_v6 = vrot.slane %v3467_v31, 4  ;;  %v3404_v17 = vrot.slane %v3403_v9, 4  ;;  %v3423_v12 = vsel %vm5528_vm4, %v3418_v33, %v3422_v57  ;;  %v3665_v31 = vsel %vm5910_vm13, %v4467_v47, %v3664_v49  ;;  %v4519_v49 = vld [vmem:[%s6422_s5] ss:$0 sm:$0xff] }
 0x217   : > { %4952 = vmatprep.subr.bf16.mxu1 %v5305_v55  ;;  %v4490_v25 = vcombine.low %v3661_v8, %v3665_v31  ;;  %v3672_v9 = vrot.slane %v6265_v59, 5  ;;  %v3640_v59 = vld [vmem:[#allocation2 + $0x40] sm:$0xe] }
 0x218   : > { %v3473_v7 = vor.u32 %v3472_v19, %v3469_v6  ;;  %v3668_v6 = vrot.slane %v6269_v4, 5  ;;  %v4471_v19 = vrot.slane %v3639_v45, 9  ;;  %v4472_v57 = vrot.slane %v3640_v59, 9 }
 0x219   : > { %v3673_v33 = vsel %vm5910_vm13, %v4469_v60, %v3672_v9 }
 0x21a   : > { %4953 = vmatpush3.bf16.msra.mxu1 %v5305_v55  ;;  %v3458_v55 = vrot.slane %v3456_v44, 5  ;;  %v3474_v48 = vrot.slane %v3473_v7, 4  ;;  %v3636_v44 = vld [vmem:[#allocation2 + $0x20] sm:$0xe] }
 0x21b   : > { %4954 = vmatprep.subr.bf16.mxu1 %v5307_v0  ;;  %v4468_v26 = vrot.slane %v3636_v44, 9 }
 0x21d   : > { %4947 = vmatmul.mubr.bf16.gmra.mrb[4].mxu1 %v5306_v20  ;;  %v3408_v20 = vrot.slane %v3406_v38, 5  ;;  %v3680_v38 = vrot.slane %v6272_v21, 5  ;;  %v3669_v2 = vsel %vm5910_vm13, %v4468_v26, %v3668_v6  ;;  %v3684_v21 = vrot.slane %v6285_v34, 5 }
 0x21e   : > { %4955 = vmatpush3.bf16.msra.mxu1 %v5307_v0  ;;  %4966 = vmatprep.mubr.bf16.mxu1 %v4454_v29  ;;  %v5313_v0 = vld [vmem:[%s6419_s2 + $0x200] sm:$0xff]   ;;  %v3476_v29 = vshll.u32 %v6280_v58, 16  ;;  %v4491_v50 = vcombine.low %v3669_v2, %v3673_v33 }
 0x21f   : > { %4956 = vmatprep.subr.bf16.mxu1 %v5308_v28  ;;  %v3681_v4 = vsel %vm5910_vm13, %v4471_v19, %v3680_v38  ;;  %v3685_v11 = vsel %vm5910_vm13, %v4472_v57, %v3684_v21 }
 0x222   : > { %4957 = vmatpush3.bf16.msra.mxu1 %v5308_v28  ;;  %v3459_v28 = vor.u32 %v3458_v55, %v3455_v15  ;;  %v3641_v15 = vld [vmem:[#allocation2 + $0x48] sm:$0xe] }
 0x223   : > { %4958 = vmatprep.subr.bf16.mxu1 %v5309_v36  ;;  %v4473_v24 = vrot.slane %v3641_v15, 9 }
 0x224   : > { %v3460_v42 = vrot.slane %v3459_v28, 4 }
 0x226   : > { %4959 = vmatpush3.bf16.msra.mxu1 %v5309_v36  ;;  %v3409_v36 = vsel %vm5528_vm4, %v3404_v17, %v3408_v20  ;;  %v3465_v51 = vsel %vm5528_vm4, %v3460_v42, %v3464_v63 }
 0x227   : > { %4960 = vmatprep.subr.bf16.mxu1 %v5310_v54  ;;  %v4455_v32 = vcombine.low %v3409_v36, %v3423_v12 }
 0x22a   : > { %4961 = vmatpush3.bf16.msra.mxu1 %v5310_v54  ;;  %v3478_v54 = vrot.slane %v3476_v29, 5 }
 0x22b   : > { %4962 = vmatprep.subr.bf16.mxu1 %v5311_v10 }
 0x22c   : > { %v3479_v53 = vsel %vm5528_vm4, %v3474_v48, %v3478_v54 }
 0x22d   : > { %v4457_v35 = vcombine.low %v3465_v51, %v3479_v53 }
 0x22e   : > { %4963 = vmatpush3.bf16.msra.mxu1 %v5311_v10  ;;  %v5316_v10 = vld [vmem:[%s6419_s2 + $0x218] sm:$0xff]  }
 0x22f   : > { %4964 = vmatprep.subr.bf16.mxu1 %v5312_v52 }
 0x232   : > { %4965 = vmatpush3.bf16.msra.mxu1 %v5312_v52  ;;  %v4470_v52 = vrot.slane %v3638_v16, 9 }
 0x233   : > { %4974 = vmatprep.subr.bf16.mxu1 %v5313_v0 }
 0x234   : > { %v3677_v55 = vsel %vm5910_vm13, %v4470_v52, %v3676_v22 }
 0x235   : > { %4967 = vmatmul.mubr.bf16.vlgmr.msra.gmra.mrb[0].mxu1 %v4455_v32  ;;  %v4492_v17 = vcombine.low %v3677_v55, %v3681_v4 }
 0x236   : > { %4970 = vmatprep.mubr.bf16.mxu1 %v4456_v40  ;;  %4975 = vmatpush3.bf16.msra.mxu1 %v5313_v0  ;;  %v3688_v0 = vrot.slane %v6280_v58, 5 }
 0x237   : > { %4976 = vmatprep.subr.bf16.mxu1 %v5314_v62 }
 0x238   : > { %v3689_v14 = vsel %vm5910_vm13, %v4473_v24, %v3688_v0 }
 0x239   : > { %v4493_v7 = vcombine.low %v3685_v11, %v3689_v14 }
 0x23a   : > { %4977 = vmatpush3.bf16.msra.mxu1 %v5314_v62 }
 0x23b   : > { %4978 = vmatprep.subr.bf16.mxu1 %v5315_v56 }
 0x23d   : > { %4971 = vmatmul.mubr.bf16.gmra.mrb[4].mxu1 %v4457_v35 }
 0x23e   : > { %4979 = vmatpush3.bf16.msra.mxu1 %v5315_v56  ;;  %4990 = vmatprep.mubr.bf16.mxu1 %v4490_v25 }
 0x23f   : > { %4980 = vmatprep.subr.bf16.mxu1 %v5316_v10 }
 0x242   : > { %4981 = vmatpush3.bf16.msra.mxu1 %v5316_v10 }
 0x243   : > { %4982 = vmatprep.subr.bf16.mxu1 %v5317_v41 }
 0x246   : > { %4983 = vmatpush3.bf16.msra.mxu1 %v5317_v41 }
 0x247   : > { %4984 = vmatprep.subr.bf16.mxu1 %v5318_v61 }
 0x24a   : > { %4985 = vmatpush3.bf16.msra.mxu1 %v5318_v61 }
 0x24b   : > { %4986 = vmatprep.subr.bf16.mxu1 %v5319_v39 }
 0x24e   : > { %4987 = vmatpush3.bf16.msra.mxu1 %v5319_v39 }
 0x24f   : > { %4988 = vmatprep.subr.bf16.mxu1 %v5320_v3 }
 0x252   : > { %4989 = vmatpush3.bf16.msra.mxu1 %v5320_v3 }
 0x255   : > { %4991 = vmatmul.mubr.bf16.vlgmr.msra.gmra.mrb[0].mxu1 %v4491_v50 }
 0x256   : > { %4994 = vmatprep.mubr.bf16.mxu1 %v4492_v17 }
 0x25d   : > { %4995 = vmatmul.mubr.bf16.gmra.mrb[4].mxu1 %v4493_v7 }
 0x28f   : > { %v4824_v20 = vpop.f32.mrb[8].mxu0 }
 0x290   : > { %v2275_v12 = vpop.f32.mrb[9].mxu0 }
 0x291   : > { %v4825_v28 = vpop.f32.mrb[10].mxu0 }
 0x292   : > { %v2278_v29 = vpop.f32.mrb[11].mxu0 }
 0x297   : > { %v4828_v30 = vpop.f32.mrb[12].mxu0 }
 0x298   : > { %v2291_v43 = vpop.f32.mrb[13].mxu0 }
 0x299   : > { %v4829_v34 = vpop.f32.mrb[14].mxu0 }
 0x29a   : > { %v2294_v36 = vpop.f32.mrb[15].mxu0 }
 0x29f   : > { %v5002_v58 = vpop.f32.mrb[16].mxu0 }
 0x2a0   : > { %v3929_v5 = vpop.f32.mrb[17].mxu0 }
 0x2a1   : > { %v5003_v37 = vpop.f32.mrb[18].mxu0 }
 0x2a2   : > { %v3932_v32 = vpop.f32.mrb[19].mxu0 }
 0x2a7   : > { %v5006_v23 = vpop.f32.mrb[20].mxu0 }
 0x2a8   : > { %v3945_v62 = vpop.f32.mrb[21].mxu0 }
 0x2a9   : > { %v5007_v13 = vpop.f32.mrb[22].mxu0 }
 0x2aa   : > { %v3948_v40 = vpop.f32.mrb[23].mxu0 }
 0x328   : > { %v4992_v42 = vpop.f32.mrb[0].mxu1 }
 0x329   : > { %v5008_v48 = vadd.f32 %v4992_v42, %v4824_v20  ;;  %v3805_v54 = vpop.f32.mrb[1].mxu1 }
 0x32a   : > { %v5012_v18 = vadd.f32 %v3805_v54, %v2275_v12  ;;  %v4993_v46 = vpop.f32.mrb[2].mxu1 }
 0x32b   : > { %v5009_v63 = vadd.f32 %v5008_v48, %v5002_v58  ;;  %v5016_v56 = vadd.f32 %v4993_v46, %v4825_v28  ;;  %v3808_v47 = vpop.f32.mrb[3].mxu1 }
 0x32c   : > { %v5013_v51 = vadd.f32 %v5012_v18, %v3929_v5  ;;  %v5020_v53 = vadd.f32 %v3808_v47, %v2278_v29 }
 0x32d   : > { %v5010_v8 = vadd.f32 %v5009_v63, %v4510_v27  ;;  %v5017_v35 = vadd.f32 %v5016_v56, %v4510_v27 }
 0x32e   : > { %v5014_v31 = vadd.f32 %v5013_v51, %v4510_v27  ;;  %v5021_v10 = vadd.f32 %v5020_v53, %v4510_v27 }
 0x32f   : > { %v5011_v25 = vadd.f32 %v5010_v8, %v4519_v49  ;;  %v5018_v41 = vadd.f32 %v5017_v35, %v5003_v37 }
 0x330   : > { %v5015_v61 = vadd.f32 %v5014_v31, %v4519_v49  ;;  %v5022_v39 = vadd.f32 %v5021_v10, %v3932_v32  ;;  %v4996_v1 = vpop.f32.mrb[4].mxu1 }
 0x331   : > { %v3985_v16 = vmax.f32 %v5011_v25, 0.0  ;;  %v5019_v3 = vadd.f32 %v5018_v41, %v4519_v49  ;;  %v5024_v44 = vadd.f32 %v4996_v1, %v4828_v30  ;;  %v3821_v60 = vpop.f32.mrb[5].mxu1 }
 0x332   : > { %v3983_v9 = vmax.f32 %v5015_v61, 0.0  ;;  %v5023_v45 = vadd.f32 %v5022_v39, %v4519_v49  ;;  %v5028_v52 = vadd.f32 %v3821_v60, %v2291_v43  ;;  %v4997_v22 = vpop.f32.mrb[6].mxu1 }
 0x333   : > { %3993 = vst [vmem:[%s6355_s15 + $0x10] sm:$0xff] %v3985_v16  ;;  %v3986_v26 = vmax.f32 %v5019_v3, 0.0  ;;  %v5025_v6 = vadd.f32 %v5024_v44, %v4510_v27  ;;  %v5032_v19 = vadd.f32 %v4997_v22, %v4829_v34  ;;  %v3824_v38 = vpop.f32.mrb[7].mxu1 }
 0x334   : > { %3991 = vst [vmem:[%s6355_s15] sm:$0xff] %v3983_v9  ;;  %v3984_v33 = vmax.f32 %v5023_v45, 0.0  ;;  %v5029_v15 = vadd.f32 %v5028_v52, %v4510_v27  ;;  %v5036_v55 = vadd.f32 %v3824_v38, %v2294_v36 }
 0x335   : > { %3994 = vst [vmem:[%s6355_s15 + $0x18] sm:$0xff] %v3986_v26  ;;  %v5026_v59 = vadd.f32 %v5025_v6, %v5006_v23  ;;  %v5033_v2 = vadd.f32 %v5032_v19, %v4510_v27 }
 0x336   : > { %3992 = vst [vmem:[%s6355_s15 + $0x8] sm:$0xff] %v3984_v33  ;;  %v5030_v50 = vadd.f32 %v5029_v15, %v3945_v62  ;;  %v5037_v4 = vadd.f32 %v5036_v55, %v4510_v27 }
 0x337   : > { %v5027_v24 = vadd.f32 %v5026_v59, %v4519_v49  ;;  %v5034_v17 = vadd.f32 %v5033_v2, %v5007_v13 }
 0x338   : > { %v5031_v57 = vadd.f32 %v5030_v50, %v4519_v49  ;;  %v5038_v21 = vadd.f32 %v5037_v4, %v3948_v40 }
 0x339   : > { %v3989_v0 = vmax.f32 %v5027_v24, 0.0  ;;  %v5035_v11 = vadd.f32 %v5034_v17, %v4519_v49 }
 0x33a   : > { %v3987_v14 = vmax.f32 %v5031_v57, 0.0  ;;  %v5039_v7 = vadd.f32 %v5038_v21, %v4519_v49 }
 0x33b   : > { %3997 = vst [vmem:[%s6355_s15 + $0x30] sm:$0xff] %v3989_v0  ;;  %v3990_v20 = vmax.f32 %v5035_v11, 0.0 }
 0x33c   : > { %3995 = vst [vmem:[%s6355_s15 + $0x20] sm:$0xff] %v3987_v14  ;;  %v3988_v12 = vmax.f32 %v5039_v7, 0.0 }
 0x33d   : > { %3998 = vst [vmem:[%s6355_s15 + $0x38] sm:$0xff] %v3990_v20 }
 0x33e   : > { %3996 = vst [vmem:[%s6355_s15 + $0x28] sm:$0xff] %v3988_v12 }
 0x33f   : > { %5338 = shalt.err (!%p5335_p3)
}
 0x340   : > { %s5339_s29 = scalar_lea.hbm %s6367_s20, 1024  ;;  %s5343_s14 = scalar_lea.hbm %s6424_s7, 2048 }
 0x341   : > { %p5340_p4 = scmp.ne.s32.totalorder %s6367_s20, %s5339_s29  ;;  %p5344_p9 = scmp.lt.u32.totalorder %s6367_s20, %s6424_s7 }
 0x342   : > { %p5345_p10 = scmp.lt.u32.totalorder %s5343_s14, %s5339_s29  ;;  %p5347_p12 = scmp.lt.u32.totalorder %s5339_s29, %s6367_s20 }
 0x343   : > { %p5341_p7 = pnand %p5340_p4, %p5471_p5 }
 0x344   : > { %p5346_p11 = por %p5345_p10, %p5344_p9 }
 0x345   : > { %p5342_p8 = pneg %p5341_p7 }
 0x346   : > { %p5348_p13 = por %p5347_p12, %p5346_p11 }
 0x348   : > { %p5349_p0 = pnand %p5348_p13, %p5342_p8 }
 0x34a   : > { %5352 = shalt.err (!%p5349_p0)
}
 0x34b   : > { %s5391_s18 = smov 128   ;;  %s5392_s19 = smov 8  }
 0x34c   : > { %5171 = dma.vmem_to_hbm [thread:$0]  (%p5471_p5), %s6369_s17, 1024, %s6367_s20, %s6376_s28, %s5391_s18, %s5391_s18, %s5392_s19  }
 0x34d PF: > { %p5177_p1 = scmp.ge.s32.totalorder %s5387_s27, 2  ;;  %s4028_s22 = sand.u32 1, %s5375_s24  }
 0x34e   : > { %s4029_s23 = scalar_lea.sflag [#allocation4], %s4028_s22 }
 0x34f   : > { %p5174_p2 = pnand %p5177_p1, %p5475_p6 }
 0x351   : > { %5370 = dma.done.wait (!%p5174_p2), %s4029_s23, 1024  }
 0x352   : > { %5372 = vsyncadd (!%p5174_p2), %s4029_s23, 4294966272  ;;  %p17_p3 = scmp.ge.s32.totalorder %s5458_s30, 4   ;;  %s6435_s24 = smov %s5379_s25 }
 0x353   : > { %s6436_s25 = smov %s5383_s26  ;;  %s6437_s26 = smov %s5469_s10 }
 0x354   : > { %s6438_s27 = smov %s5458_s30  ;;  %19 = sbr.rel (!%p17_p3) target bundleno = 3 (0x3), region = 106 }
 0x35b   :  { %4034 = vsyncpa [#allocation4], 1 }
 0x35c   :  { %4036 = vsyncpa [#allocation4 + $0x1], 1 }

</bundles_post_ra>
